<compile_context>
chip_gen: v7x
topology: tpu7x:2x2x1
jax: 0.10.0
libtpu: 0.0.40
codegen_flags: <defaults>
</compile_context>

<pallas_src>
import functools

import jax
import jax.numpy as jnp
from jax import lax
from jax.experimental import pallas as pl
from jax.experimental.pallas import tpu as pltpu

_NEG = -1e30  # additive mask for invalid / wrapped time positions


def _round_up(x, m):
    return ((x + m - 1) // m) * m


def based_cnn_fused_kernel(ids_ref, table_ref, wim_ref, tmask_ref, bconv_ref,
                           wfc_ref, bfc_ref, out_ref):
    """Embedding gather + all convs + ReLU + max-over-time + fc1, fused.

    ids_ref:   (TB, L)          int32  batch tile of token ids
    table_ref: (V, E)           bf16   frozen embedding table (grid-invariant)
    wim_ref:   (max_ks*E, C)    bf16   im2col-packed conv weights, all kernel
                                       sizes concatenated (zero-padded) along C
    tmask_ref: (L, C)           f32    0 where t is a valid conv output for that
                                       column's kernel size, -1e30 otherwise
    bconv_ref: (1, C)           f32    concatenated conv biases (zero-padded)
    wfc_ref:   (C, CP)          f32    fc1 weight (zero rows/cols on padding)
    bfc_ref:   (1, CP)          f32
    out_ref:   (TB, CP)         f32    lane-dense (CP = 128) logits block
    """
    TB, L = ids_ref.shape
    V, E = table_ref.shape
    KD, C = wim_ref.shape
    max_ks = KD // E
    n = TB * L

    # --- in-kernel embedding gather: one-hot(ids) @ table on the MXU.
    # Exact: each output row is a single bf16 table row (products exact in f32).
    ids = ids_ref[...]                                          # (TB, L) int32
    v_iota = lax.broadcasted_iota(jnp.int32, (TB, L, V), 2)
    onehot = (ids[:, :, None] == v_iota).astype(jnp.bfloat16)   # (TB, L, V)
    emb2d = jnp.dot(onehot.reshape(n, V), table_ref[...],
                    preferred_element_type=jnp.float32)         # (n, E) f32

    # --- im2col: tap j is the emb rows shifted up by j (XLU sublane rotate on
    # the small (n, E) slab), concatenated along the contraction axis.
    # Wrapped rows (t + j crossing a sample boundary / end of the tile) are
    # harmless: tap j has nonzero weights only for kernel sizes ks > j, and for
    # those columns tmask == -1e30 at every t >= L - ks + 1.  This invariant
    # ties the roll to the mask packing below -- keep them in sync.
    taps = [emb2d]
    for j in range(1, max_ks):                                  # static unroll (<=5)
        taps.append(pltpu.roll(emb2d, shift=n - j, axis=0))
    im2col = jnp.concatenate(taps, axis=1).astype(jnp.bfloat16)  # (n, max_ks*E)

    # --- single MXU matmul does all kernel sizes + all taps, f32 accumulation.
    conv = jnp.dot(im2col, wim_ref[...],
                   preferred_element_type=jnp.float32)          # (n, C)

    # --- mask invalid / wrapped time steps, max-pool over time.
    conv = conv.reshape(TB, L, C) + tmask_ref[...]              # (L,C) bcasts over batch
    feat = jnp.max(conv, axis=1)                                # (TB, C)

    # Bias + ReLU hoisted past the max-pool (bias const over t, ReLU monotone).
    feat = jnp.maximum(feat + bconv_ref[...], 0.0)

    # Dropout is identity at inference; fused fc1, lane-dense (CP=128) store.
    out_ref[...] = (jnp.dot(feat, wfc_ref[...],
                            preferred_element_type=jnp.float32) + bfc_ref[...])


def pack_params(pre_embed, conv_ws, conv_bs, w_fc, b_fc, kernel_sizes, seq_len,
                lane=128):
    """Pack params into the lane-dense / im2col layout the kernel expects."""
    kernel_sizes = tuple(int(k) for k in kernel_sizes)
    max_ks = max(kernel_sizes)
    # At least one valid conv output per column is required (else the -1e30
    # mask would silently turn into ReLU(bias) = finite garbage).
    assert seq_len >= max_ks, "seq_len must be >= max kernel size"
    _, E, K = conv_ws[0].shape
    c_real = len(kernel_sizes) * K
    C = _round_up(c_real, lane)
    class_num = w_fc.shape[-1]
    CP = _round_up(class_num, lane)

    wim = jnp.zeros((max_ks * E, C), jnp.float32)
    bconv = jnp.zeros((1, C), jnp.float32)
    tmask = jnp.zeros((seq_len, C), jnp.float32)
    t_idx = jnp.arange(seq_len)[:, None]
    for s, ks in enumerate(kernel_sizes):
        col = s * K
        w = conv_ws[s].astype(jnp.float32)                      # (ks, E, K)
        for j in range(ks):
            wim = wim.at[j * E:(j + 1) * E, col:col + K].set(w[j])
        bconv = bconv.at[:, col:col + K].set(
            jnp.reshape(conv_bs[s], (1, K)).astype(jnp.float32))
        valid = jnp.where(t_idx < seq_len - ks + 1, 0.0, _NEG).astype(jnp.float32)
        tmask = tmask.at[:, col:col + K].set(jnp.broadcast_to(valid, (seq_len, K)))

    wfc = jnp.zeros((C, CP), jnp.float32).at[:c_real, :class_num].set(
        w_fc.astype(jnp.float32))
    bfc = jnp.zeros((1, CP), jnp.float32).at[:, :class_num].set(
        jnp.reshape(b_fc, (1, -1)).astype(jnp.float32))

    table = pre_embed.astype(jnp.bfloat16)                      # frozen embedding
    # bf16 MXU operands; accumulation stays f32 inside the kernel.
    return table, wim.astype(jnp.bfloat16), tmask, bconv, wfc, bfc


def based_cnn_forward(x, table, wim, tmask, bconv, wfc, bfc, *,
                      class_num, batch_tile=128):
    """x: (B, L) int32 token ids. Returns (B, class_num) f32 logits."""
    B, L = x.shape
    V, E = table.shape
    CP = wfc.shape[-1]

    # Small-vocab assumption for the in-kernel one-hot gather.
    # TODO(synk): large vocab -> PrefetchScalarGridSpec + row-gather DMA.
    assert V * E * 2 <= 8 * 1024 * 1024, "embedding table too large for VMEM gather"
    # L should be a multiple of 8 so in-kernel reshapes are pure relabels.
    # TODO(synk): for long L, add a time-chunk grid axis with a running-max
    # accumulator (pl.when init/finalize) and a (max_ks-1)-row halo.

    # Batch tile: multiple of 16 (bf16 sublanes); pad B instead of collapsing
    # the whole array into one block.
    tb = min(int(batch_tile), _round_up(B, 16))
    tb = _round_up(tb, 16)
    Bp = _round_up(B, tb)
    ids = x.astype(jnp.int32)
    if Bp != B:
        ids = jnp.pad(ids, ((0, Bp - B), (0, 0)))   # pad rows use token id 0; sliced away

    out = pl.pallas_call(
        based_cnn_fused_kernel,
        out_shape=jax.ShapeDtypeStruct((Bp, CP), jnp.float32),
        grid=(Bp // tb,),
        in_specs=[
            pl.BlockSpec((tb, L), lambda i: (i, 0)),            # batch-tiled token ids
            pl.BlockSpec(table.shape, lambda i: (0, 0)),        # grid-invariant operands
            pl.BlockSpec(wim.shape, lambda i: (0, 0)),
            pl.BlockSpec(tmask.shape, lambda i: (0, 0)),
            pl.BlockSpec(bconv.shape, lambda i: (0, 0)),
            pl.BlockSpec(wfc.shape, lambda i: (0, 0)),
            pl.BlockSpec(bfc.shape, lambda i: (0, 0)),
        ],
        out_specs=pl.BlockSpec((tb, CP), lambda i: (i, 0)),     # lane-dense output block
        compiler_params=pltpu.CompilerParams(
            dimension_semantics=("parallel",),   # batch tiles -> megacore / 2 TCs
            vmem_limit_bytes=32 * 1024 * 1024,   # safe on v5e / v6e / v7x (64 MiB phys)
        ),
    )(ids, table, wim, tmask, bconv, wfc, bfc)
    return out[:B, :class_num].astype(jnp.float32)


def reference_forward(x, pre_embed, conv_ws, conv_bs, w_fc, b_fc, kernel_sizes):
    """Plain-JAX reference mirroring the PyTorch module (same bf16 operands)."""
    emb = jnp.take(pre_embed.astype(jnp.bfloat16), x, axis=0).astype(jnp.float32)
    feats = []
    for ks, w, b in zip(kernel_sizes, conv_ws, conv_bs):
        w = w.astype(jnp.bfloat16).astype(jnp.float32)          # (ks, E, K)
        T = emb.shape[1] - ks + 1
        conv = jnp.zeros((emb.shape[0], T, w.shape[-1]), jnp.float32)
        for j in range(ks):
            conv = conv + jnp.einsum("ble,ek->blk", emb[:, j:j + T, :], w[j])
        conv = jax.nn.relu(conv + jnp.reshape(b, (1, 1, -1)))
        feats.append(jnp.max(conv, axis=1))
    feats = jnp.concatenate(feats, axis=1)
    return feats @ w_fc + jnp.reshape(b_fc, (1, -1))


if __name__ == "__main__":
    # Small deterministic config consistent with the module.
    B, L = 50, 16                       # B is intentionally not a tile multiple
    vocab, embed_dim = 64, 32
    kernel_num = 8
    kernel_sizes = (3, 4, 5)
    class_num = 4
    padding_idx = 0

    key = jax.random.PRNGKey(0)
    keys = jax.random.split(key, 2 + 2 * len(kernel_sizes) + 2)

    pre_embed = jax.random.normal(keys[0], (vocab, embed_dim), jnp.float32) * 0.1
    pre_embed = pre_embed.at[padding_idx].set(0.0)   # frozen, padding row zeroed
    x = jax.random.randint(keys[1], (B, L), 0, vocab, dtype=jnp.int32)

    # Conv2d(1, K, (ks, E)) weights stored as (ks, E, K); biases (K,).
    conv_ws, conv_bs = [], []
    for i, ks in enumerate(kernel_sizes):
        conv_ws.append(jax.random.normal(
            keys[2 + 2 * i], (ks, embed_dim, kernel_num), jnp.float32) * 0.05)
        conv_bs.append(jax.random.normal(
            keys[3 + 2 * i], (kernel_num,), jnp.float32) * 0.05)

    feat_dim = len(kernel_sizes) * kernel_num
    w_fc = jax.random.normal(keys[-2], (feat_dim, class_num), jnp.float32) * 0.05
    b_fc = jax.random.normal(keys[-1], (class_num,), jnp.float32) * 0.05

    packed = pack_params(pre_embed, conv_ws, conv_bs, w_fc, b_fc,
                         kernel_sizes, seq_len=L)
    fwd = jax.jit(functools.partial(based_cnn_forward,
                                    class_num=class_num, batch_tile=16))

    logits = jax.block_until_ready(fwd(x, *packed))
    assert logits.shape == (B, class_num), logits.shape
    assert logits.dtype == jnp.float32, logits.dtype

    ref = jax.block_until_ready(
        reference_forward(x, pre_embed, conv_ws, conv_bs, w_fc, b_fc, kernel_sizes))
    max_err = float(jnp.max(jnp.abs(logits - ref)))
    assert max_err < 1e-2, f"max abs error vs reference: {max_err}"

    print("KERNEL_OK")
</pallas_src>

<mosaic_0001>
module attributes {stable_mosaic.version = 11 : i64} {
  func.func @based_cnn_fused_kernel(%arg0: i32, %arg1: memref<16x16xi32, #tpu.memory_space<vmem>>, %arg2: memref<64x32xbf16, #tpu.memory_space<vmem>>, %arg3: memref<160x128xbf16, #tpu.memory_space<vmem>>, %arg4: memref<16x128xf32, #tpu.memory_space<vmem>>, %arg5: memref<1x128xf32, #tpu.memory_space<vmem>>, %arg6: memref<128x128xf32, #tpu.memory_space<vmem>>, %arg7: memref<1x128xf32, #tpu.memory_space<vmem>>, %arg8: memref<16x128xf32, #tpu.memory_space<vmem>>) attributes {dimension_semantics = [#tpu.dimension_semantics<parallel>], iteration_bounds = array<i64: 4>, scalar_prefetch = 0 : i64, scratch_operands = 0 : i64, tpu.core_type = #tpu.core_type<tc>, window_params = [{transform_indices = @transform_0, window_bounds = array<i64: 16, 16>}, {pipeline_mode = #tpu.pipeline_mode<synchronous>, transform_indices = @transform_1, window_bounds = array<i64: 64, 32>}, {pipeline_mode = #tpu.pipeline_mode<synchronous>, transform_indices = @transform_2, window_bounds = array<i64: 160, 128>}, {pipeline_mode = #tpu.pipeline_mode<synchronous>, transform_indices = @transform_3, window_bounds = array<i64: 16, 128>}, {pipeline_mode = #tpu.pipeline_mode<synchronous>, transform_indices = @transform_4, window_bounds = array<i64: 1, 128>}, {pipeline_mode = #tpu.pipeline_mode<synchronous>, transform_indices = @transform_5, window_bounds = array<i64: 128, 128>}, {pipeline_mode = #tpu.pipeline_mode<synchronous>, transform_indices = @transform_6, window_bounds = array<i64: 1, 128>}, {transform_indices = @transform_7, window_bounds = array<i64: 16, 128>}]} {
    %c0 = arith.constant 0 : index
    %c0_0 = arith.constant 0 : index
    %0 = vector.load %arg1[%c0, %c0_0] : memref<16x16xi32, #tpu.memory_space<vmem>>, vector<16x16xi32>
    %1 = tpu.iota {dimensions = array<i32: 2>} : vector<16x16x64xi32>
    %2 = vector.shape_cast %0 : vector<16x16xi32> to vector<16x16x1xi32>
    %3 = vector.broadcast %2 : vector<16x16x1xi32> to vector<16x16x64xi32>
    %4 = arith.cmpi eq, %3, %1 : vector<16x16x64xi32>
    %5 = arith.extui %4 : vector<16x16x64xi1> to vector<16x16x64xi32>
    %6 = arith.sitofp %5 : vector<16x16x64xi32> to vector<16x16x64xf32>
    %7 = arith.truncf %6 : vector<16x16x64xf32> to vector<16x16x64xbf16>
    %8 = vector.shape_cast %7 : vector<16x16x64xbf16> to vector<256x64xbf16>
    %c0_1 = arith.constant 0 : index
    %c0_2 = arith.constant 0 : index
    %9 = vector.load %arg2[%c0_1, %c0_2] : memref<64x32xbf16, #tpu.memory_space<vmem>>, vector<64x32xbf16>
    %cst = arith.constant dense<0.000000e+00> : vector<256x32xf32>
    %10 = tpu.matmul %8, %9, %cst {dimension_numbers = #tpu.dot_dimension_numbers<[1], [0], [0], [1], [0, 0, 1, 1], [], []>} : vector<256x64xbf16>, vector<64x32xbf16>, vector<256x32xf32> -> vector<256x32xf32>
    %c255_i32 = arith.constant 255 : i32
    %11 = tpu.dynamic_rotate %10 by %c255_i32 dim 0 : vector<256x32xf32>, i32 -> vector<256x32xf32>
    %c254_i32 = arith.constant 254 : i32
    %12 = tpu.dynamic_rotate %10 by %c254_i32 dim 0 : vector<256x32xf32>, i32 -> vector<256x32xf32>
    %c253_i32 = arith.constant 253 : i32
    %13 = tpu.dynamic_rotate %10 by %c253_i32 dim 0 : vector<256x32xf32>, i32 -> vector<256x32xf32>
    %c252_i32 = arith.constant 252 : i32
    %14 = tpu.dynamic_rotate %10 by %c252_i32 dim 0 : vector<256x32xf32>, i32 -> vector<256x32xf32>
    %15 = tpu.concatenate %10, %11, %12, %13, %14 in 1 : vector<256x32xf32>, vector<256x32xf32>, vector<256x32xf32>, vector<256x32xf32>, vector<256x32xf32> -> vector<256x160xf32>
    %16 = arith.truncf %15 : vector<256x160xf32> to vector<256x160xbf16>
    %c0_3 = arith.constant 0 : index
    %c0_4 = arith.constant 0 : index
    %17 = vector.load %arg3[%c0_3, %c0_4] : memref<160x128xbf16, #tpu.memory_space<vmem>>, vector<160x128xbf16>
    %cst_5 = arith.constant dense<0.000000e+00> : vector<256x128xf32>
    %18 = tpu.matmul %16, %17, %cst_5 {dimension_numbers = #tpu.dot_dimension_numbers<[1], [0], [0], [1], [0, 0, 1, 1], [], []>} : vector<256x160xbf16>, vector<160x128xbf16>, vector<256x128xf32> -> vector<256x128xf32>
    %19 = vector.shape_cast %18 : vector<256x128xf32> to vector<16x16x128xf32>
    %c0_6 = arith.constant 0 : index
    %c0_7 = arith.constant 0 : index
    %20 = vector.load %arg4[%c0_6, %c0_7] : memref<16x128xf32, #tpu.memory_space<vmem>>, vector<16x128xf32>
    %21 = vector.shape_cast %20 : vector<16x128xf32> to vector<1x16x128xf32>
    %22 = vector.broadcast %21 : vector<1x16x128xf32> to vector<16x16x128xf32>
    %23 = arith.addf %19, %22 : vector<16x16x128xf32>
    %cst_8 = arith.constant dense<0xFF800000> : vector<16x128xf32>
    %24 = vector.multi_reduction <maximumf>, %23, %cst_8 [1] : vector<16x16x128xf32> to vector<16x128xf32>
    %c0_9 = arith.constant 0 : index
    %c0_10 = arith.constant 0 : index
    %25 = vector.load %arg5[%c0_9, %c0_10] : memref<1x128xf32, #tpu.memory_space<vmem>>, vector<1x128xf32>
    %26 = vector.broadcast %25 : vector<1x128xf32> to vector<16x128xf32>
    %27 = arith.addf %24, %26 : vector<16x128xf32>
    %cst_11 = arith.constant 0.000000e+00 : f32
    %28 = vector.broadcast %cst_11 : f32 to vector<16x128xf32>
    %29 = arith.maximumf %27, %28 : vector<16x128xf32>
    %c0_12 = arith.constant 0 : index
    %c0_13 = arith.constant 0 : index
    %30 = vector.load %arg6[%c0_12, %c0_13] : memref<128x128xf32, #tpu.memory_space<vmem>>, vector<128x128xf32>
    %cst_14 = arith.constant dense<0.000000e+00> : vector<16x128xf32>
    %31 = tpu.matmul %29, %30, %cst_14 {dimension_numbers = #tpu.dot_dimension_numbers<[1], [0], [0], [1], [0, 0, 1, 1], [], []>} : vector<16x128xf32>, vector<128x128xf32>, vector<16x128xf32> -> vector<16x128xf32>
    %c0_15 = arith.constant 0 : index
    %c0_16 = arith.constant 0 : index
    %32 = vector.load %arg7[%c0_15, %c0_16] : memref<1x128xf32, #tpu.memory_space<vmem>>, vector<1x128xf32>
    %33 = vector.broadcast %32 : vector<1x128xf32> to vector<16x128xf32>
    %34 = arith.addf %31, %33 : vector<16x128xf32>
    %c0_17 = arith.constant 0 : index
    %c0_18 = arith.constant 0 : index
    %35 = vector.load %arg8[%c0_17, %c0_18] : memref<16x128xf32, #tpu.memory_space<vmem>>, vector<16x128xf32>
    tpu.vector_store %arg8[%c0_17, %c0_18], %34 {strides = array<i32>} : memref<16x128xf32, #tpu.memory_space<vmem>>, vector<16x128xf32>,
    return
  }
  func.func @transform_0(%arg0: i32) -> (i32, i32) {
    %c0_i32 = arith.constant 0 : i32
    %c0_i32_0 = arith.constant 0 : i32
    return %arg0, %c0_i32 : i32, i32
  }
  func.func @transform_1(%arg0: i32) -> (i32, i32) {
    %c0_i32 = arith.constant 0 : i32
    %c0_i32_0 = arith.constant 0 : i32
    %c0_i32_1 = arith.constant 0 : i32
    return %c0_i32, %c0_i32_0 : i32, i32
  }
  func.func @transform_2(%arg0: i32) -> (i32, i32) {
    %c0_i32 = arith.constant 0 : i32
    %c0_i32_0 = arith.constant 0 : i32
    %c0_i32_1 = arith.constant 0 : i32
    return %c0_i32, %c0_i32_0 : i32, i32
  }
  func.func @transform_3(%arg0: i32) -> (i32, i32) {
    %c0_i32 = arith.constant 0 : i32
    %c0_i32_0 = arith.constant 0 : i32
    %c0_i32_1 = arith.constant 0 : i32
    return %c0_i32, %c0_i32_0 : i32, i32
  }
  func.func @transform_4(%arg0: i32) -> (i32, i32) {
    %c0_i32 = arith.constant 0 : i32
    %c0_i32_0 = arith.constant 0 : i32
    %c0_i32_1 = arith.constant 0 : i32
    return %c0_i32, %c0_i32_0 : i32, i32
  }
  func.func @transform_5(%arg0: i32) -> (i32, i32) {
    %c0_i32 = arith.constant 0 : i32
    %c0_i32_0 = arith.constant 0 : i32
    %c0_i32_1 = arith.constant 0 : i32
    return %c0_i32, %c0_i32_0 : i32, i32
  }
  func.func @transform_6(%arg0: i32) -> (i32, i32) {
    %c0_i32 = arith.constant 0 : i32
    %c0_i32_0 = arith.constant 0 : i32
    %c0_i32_1 = arith.constant 0 : i32
    return %c0_i32, %c0_i32_0 : i32, i32
  }
  func.func @transform_7(%arg0: i32) -> (i32, i32) {
    %c0_i32 = arith.constant 0 : i32
    %c0_i32_0 = arith.constant 0 : i32
    return %arg0, %c0_i32 : i32, i32
  }
}

</mosaic_0001>

<bundles_post_ra>
// kernel: based_cnn_forward.1
= control target key start
LH: loop header
LB: loop body
LE: loop exit
PB: predicated region body
PF: predicated region fallthrough
CT: control target
= control target key end

     0   :  { %s2852_s24 = smov 0   ;;  %s4476_s0 = inlined_call_operand.vmem [shape: s32[64,16], index: 0, kind: input, shape index: {}]   ;;  %s4477_s1 = inlined_call_operand.vmem [shape: bf16[64,32], index: 1, kind: input, shape index: {}]   ;;  %s4478_s2 = inlined_call_operand.vmem [shape: bf16[160,128], index: 2, kind: input, shape index: {}]   ;;  %s4479_s3 = inlined_call_operand.vmem [shape: f32[16,128], index: 3, kind: input, shape index: {}]   ;;  %s4480_s4 = inlined_call_operand.vmem [shape: f32[1,128], index: 4, kind: input, shape index: {}]   ;;  %s4481_s5 = inlined_call_operand.vmem [shape: f32[128,128], index: 5, kind: input, shape index: {}]   ;;  %s4482_s6 = inlined_call_operand.vmem [shape: f32[1,128], index: 6, kind: input, shape index: {}]   ;;  %s4483_s7 = inlined_call_operand.vmem [shape: f32[64,128], index: 7, kind: output, shape index: {}]  }
   0x1 LB: > { %s2276_s25 = sadd.s32 4294967295, %s2805_s24   ;;  %p2280_p0 = scmp.ge.s32.totalorder %s2805_s24, 1  ;;  %s2805_s24 = sphi %s2852_s24, %s17_s24  }
   0x2   : > { %p238_p1 = scmp.lt.s32.totalorder %s2805_s24, 5 }
   0x4   : > { %p239_p2 = pnand %p2280_p0, %p238_p1 }
   0x6   : > { %242 = sbr.rel (%p239_p2) target bundleno = 1068 (0x42c), region = 48 }
   0xd   : > { %s2281_s26 = sshll.u32 %s2276_s25, 1  ;;  %v285_v0 = vlaneseq  ;;  %v2785_v1 = vld [vmem:[%s4477_s1] sm:$0xff]   ;;  %v2786_v2 = vld [vmem:[%s4477_s1 + $0x8] sm:$0xff]   ;;  %v2787_v5 = vld [vmem:[%s4477_s1 + $0x10] sm:$0xff]   ;;  %vm607_vm4 = vcmask 523264   ;;  %v2807_v37 = vmov 0.0  }
   0xe   : > { %p271_p3 = scmp.lt.s32.totalorder %s2281_s26, 7  ;;  %2405 = vmatprep.subr.bf16.mxu0 %v2785_v1  ;;  %v2788_v9 = vld [vmem:[%s4477_s1 + $0x18] sm:$0xff]   ;;  %s2809_s16 = smov 64  }
   0xf   : > { %v2867_v3 = vshrl.u32 %v285_v0, 7  ;;  %2406 = vmatpush3.bf16.msra.mxu0 %v2785_v1  ;;  %v2896_v32 = vand.u32 127, %v285_v0  ;;  %s2810_s17 = smov 32   ;;  %s2811_s18 = smov 96  }
  0x10   : > { %s4823_s26 = smov (!%p271_p3, %s2281_s26), 7  ;;  %2407 = vmatprep.subr.bf16.mxu0 %v2786_v2 }
  0x11   : > { %v300_v4 = vsub.s32 1, %v2867_v3  ;;  %s2282_s10 = sshll.u32 %s4823_s26, 3  ;;  %v289_v6 = vsub.s32 0, %v2867_v3  ;;  %v311_v8 = vsub.s32 2, %v2867_v3  ;;  %v322_v13 = vsub.s32 3, %v2867_v3 }
  0x12   : > { %s2882_s13 = scalar_lea.vmem %s4476_s0, %s2282_s10  ;;  %v333_v15 = vsub.s32 4, %v2867_v3  ;;  %v344_v17 = vsub.s32 5, %v2867_v3  ;;  %v355_v19 = vsub.s32 6, %v2867_v3  ;;  %v366_v21 = vsub.s32 7, %v2867_v3  ;;  %s280_s21 = scalar_lea.vmem %s4483_s7, %s2282_s10 }
  0x13   : > { %v283_v7 = vld [vmem:[%s2882_s13] sm:$0xff]  ;;  %2408 = vmatpush3.bf16.msra.mxu0 %v2786_v2  ;;  %v284_v23 = vld [vmem:[%s2882_s13 + $0x8] sm:$0xff] }
  0x14   : > { %v301_v10 = vrot.slane %v283_v7, %v300_v4  ;;  %v290_v11 = vrot.slane %v283_v7, %v289_v6  ;;  %2409 = vmatprep.subr.bf16.mxu0 %v2787_v5  ;;  %v312_v12 = vrot.slane %v283_v7, %v311_v8  ;;  %v323_v14 = vrot.slane %v283_v7, %v322_v13 }
  0x15   : > { %v334_v16 = vrot.slane %v283_v7, %v333_v15  ;;  %v345_v18 = vrot.slane %v283_v7, %v344_v17  ;;  %v356_v20 = vrot.slane %v283_v7, %v355_v19  ;;  %v367_v22 = vrot.slane %v283_v7, %v366_v21 }
  0x16   : > { %303 = vbcast.lane.b32.xlu1 %v301_v10, 256  ;;  %292 = vbcast.lane.b32.xlu0 %v290_v11, 256  ;;  %v378_v24 = vrot.slane %v284_v23, %v289_v6  ;;  %v389_v25 = vrot.slane %v284_v23, %v300_v4  ;;  %v400_v26 = vrot.slane %v284_v23, %v311_v8 }
  0x17   : > { %2410 = vmatpush3.bf16.msra.mxu0 %v2787_v5  ;;  %v411_v27 = vrot.slane %v284_v23, %v322_v13  ;;  %v422_v28 = vrot.slane %v284_v23, %v333_v15  ;;  %v433_v29 = vrot.slane %v284_v23, %v344_v17  ;;  %v444_v30 = vrot.slane %v284_v23, %v355_v19 }
  0x18   : > { %2411 = vmatprep.subr.bf16.mxu0 %v2788_v9  ;;  %v455_v31 = vrot.slane %v284_v23, %v366_v21 }
  0x1a   : > { %307 = vbcast.lane.b32.xlu1 %v301_v10, 264  ;;  %296 = vbcast.lane.b32.xlu0 %v290_v11, 264 }
  0x1b   : > { %2412 = vmatpush3.bf16.msra.mxu0 %v2788_v9 }
  0x1e   : > { %318 = vbcast.lane.b32.xlu1 %v312_v12, 264  ;;  %314 = vbcast.lane.b32.xlu0 %v312_v12, 256 }
  0x22   : > { %329 = vbcast.lane.b32.xlu1 %v323_v14, 264  ;;  %325 = vbcast.lane.b32.xlu0 %v323_v14, 256 }
  0x26   : > { %340 = vbcast.lane.b32.xlu1 %v334_v16, 264  ;;  %336 = vbcast.lane.b32.xlu0 %v334_v16, 256 }
  0x2a   : > { %351 = vbcast.lane.b32.xlu1 %v345_v18, 264  ;;  %347 = vbcast.lane.b32.xlu0 %v345_v18, 256 }
  0x2e   : > { %362 = vbcast.lane.b32.xlu1 %v356_v20, 264  ;;  %358 = vbcast.lane.b32.xlu0 %v356_v20, 256 }
  0x32   : > { %373 = vbcast.lane.b32.xlu1 %v367_v22, 264  ;;  %369 = vbcast.lane.b32.xlu0 %v367_v22, 256 }
  0x36   : > { %384 = vbcast.lane.b32.xlu1 %v378_v24, 264  ;;  %380 = vbcast.lane.b32.xlu0 %v378_v24, 256 }
  0x3a   : > { %395 = vbcast.lane.b32.xlu1 %v389_v25, 264  ;;  %391 = vbcast.lane.b32.xlu0 %v389_v25, 256 }
  0x3e   : > { %406 = vbcast.lane.b32.xlu1 %v400_v26, 264  ;;  %402 = vbcast.lane.b32.xlu0 %v400_v26, 256 }
  0x42   : > { %417 = vbcast.lane.b32.xlu1 %v411_v27, 264  ;;  %413 = vbcast.lane.b32.xlu0 %v411_v27, 256 }
  0x46   : > { %428 = vbcast.lane.b32.xlu1 %v422_v28, 264  ;;  %424 = vbcast.lane.b32.xlu0 %v422_v28, 256 }
  0x4a   : > { %439 = vbcast.lane.b32.xlu1 %v433_v29, 264  ;;  %435 = vbcast.lane.b32.xlu0 %v433_v29, 256 }
  0x4e   : > { %450 = vbcast.lane.b32.xlu1 %v444_v30, 264  ;;  %446 = vbcast.lane.b32.xlu0 %v444_v30, 256 }
  0x52   : > { %461 = vbcast.lane.b32.xlu1 %v455_v31, 264  ;;  %457 = vbcast.lane.b32.xlu0 %v455_v31, 256 }
  0x88   : > { %v304_v33 = vpop.permute.xlu1 %303  ;;  %v293_v34 = vpop.permute.xlu0 %292 }
  0x89   : > { %vm465_vm0 = vcmp.eq.s32.totalorder %v304_v33, %v2896_v32  ;;  %vm463_vm1 = vcmp.eq.s32.totalorder %v293_v34, %v2896_v32 }
  0x8a   : > { %v2287_v38 = vsel %vm465_vm0, 1.0, %v2807_v37  ;;  %v2285_v39 = vsel %vm463_vm1, 1.0, %v2807_v37 }
  0x8c   : > { %v308_v35 = vpop.permute.xlu1 %307  ;;  %v297_v36 = vpop.permute.xlu0 %296 }
  0x8d   : > { %vm466_vm2 = vcmp.eq.s32.totalorder %v308_v35, %v2896_v32  ;;  %vm464_vm3 = vcmp.eq.s32.totalorder %v297_v36, %v2896_v32 }
  0x8e   : > { %v2288_v40 = vsel %vm466_vm2, 1.0, %v2807_v37  ;;  %v2286_v41 = vsel %vm464_vm3, 1.0, %v2807_v37 }
  0x8f   : > { %v560_v42 = vpack.c.bf16 %v2288_v40, %v2287_v38  ;;  %v559_v43 = vpack.c.bf16 %v2286_v41, %v2285_v39 }
  0x90   : > { %v319_v44 = vpop.permute.xlu1 %318  ;;  %v315_v45 = vpop.permute.xlu0 %314 }
  0x91   : > { %vm468_vm5 = vcmp.eq.s32.totalorder %v319_v44, %v2896_v32  ;;  %2413 = vmatprep.mubr.msk.bf16.mxu0 %vm607_vm4, %v559_v43  ;;  %vm467_vm6 = vcmp.eq.s32.totalorder %v315_v45, %v2896_v32 }
  0x92   : > { %v2290_v46 = vsel %vm468_vm5, 1.0, %v2807_v37  ;;  %v2289_v47 = vsel %vm467_vm6, 1.0, %v2807_v37  ;;  %2414 = vmatmul.mubr.msk.bf16.vlgmr.msra.gmra.mrb[0].mxu0 %vm607_vm4, %v560_v42 }
  0x93   : > { %v561_v48 = vpack.c.bf16 %v2290_v46, %v2289_v47 }
  0x94   : > { %v330_v49 = vpop.permute.xlu1 %329  ;;  %v326_v50 = vpop.permute.xlu0 %325 }
  0x95   : > { %vm470_vm7 = vcmp.eq.s32.totalorder %v330_v49, %v2896_v32  ;;  %vm469_vm8 = vcmp.eq.s32.totalorder %v326_v50, %v2896_v32  ;;  %2417 = vmatprep.mubr.msk.bf16.mxu0 %vm607_vm4, %v561_v48 }
  0x96   : > { %v2292_v51 = vsel %vm470_vm7, 1.0, %v2807_v37  ;;  %v2291_v52 = vsel %vm469_vm8, 1.0, %v2807_v37 }
  0x97   : > { %v562_v53 = vpack.c.bf16 %v2292_v51, %v2291_v52 }
  0x98   : > { %v341_v54 = vpop.permute.xlu1 %340  ;;  %v337_v55 = vpop.permute.xlu0 %336 }
  0x99   : > { %vm472_vm9 = vcmp.eq.s32.totalorder %v341_v54, %v2896_v32  ;;  %vm471_vm10 = vcmp.eq.s32.totalorder %v337_v55, %v2896_v32  ;;  %v2808_v54 = vmov 0   ;;  %v2792_v55 = vld [vmem:[%s4478_s2 + $0x18] sm:$0xff]  }
  0x9a   : > { %v2294_v56 = vsel %vm472_vm9, 1.0, %v2807_v37  ;;  %v2293_v57 = vsel %vm471_vm10, 1.0, %v2807_v37  ;;  %2418 = vmatmul.mubr.msk.bf16.gmra.mrb[4].mxu0 %vm607_vm4, %v562_v53  ;;  %v2789_v53 = vld [vmem:[%s4478_s2] sm:$0xff]   ;;  %1721 = vmatprep.subr.bf16.mxu0 %v2808_v54 }
  0x9b   : > { %v563_v58 = vpack.c.bf16 %v2294_v56, %v2293_v57  ;;  %2512 = vmatprep.subr.bf16.mxu1 %v2808_v54  ;;  %1722 = vmatpush1.bf16.msra.mxu0 %v2789_v53  ;;  %v2793_v56 = vld [vmem:[%s4478_s2 + $0x20] sm:$0xff]   ;;  %v2794_v57 = vld [vmem:[%s4478_s2 + $0x28] sm:$0xff]  }
  0x9c   : > { %v352_v59 = vpop.permute.xlu1 %351  ;;  %v348_v60 = vpop.permute.xlu0 %347  ;;  %2522 = vmatpush1.bf16.msra.mxu1 %v2789_v53  ;;  %1723 = vmatprep.subr.bf16.mxu0 %v2808_v54 }
  0x9d   : > { %vm474_vm11 = vcmp.eq.s32.totalorder %v352_v59, %v2896_v32  ;;  %vm473_vm12 = vcmp.eq.s32.totalorder %v348_v60, %v2896_v32  ;;  %2421 = vmatprep.mubr.msk.bf16.mxu0 %vm607_vm4, %v563_v58  ;;  %2513 = vmatprep.subr.bf16.mxu1 %v2808_v54  ;;  %v2795_v58 = vld [vmem:[%s4478_s2 + $0x30] sm:$0xff]   ;;  %v2796_v59 = vld [vmem:[%s4478_s2 + $0x38] sm:$0xff]   ;;  %v2797_v60 = vld [vmem:[%s4478_s2 + $0x40] sm:$0xff]  }
  0x9e   : > { %v2296_v61 = vsel %vm474_vm11, 1.0, %v2807_v37  ;;  %v2295_v62 = vsel %vm473_vm12, 1.0, %v2807_v37 }
  0x9f   : > { %v564_v63 = vpack.c.bf16 %v2296_v61, %v2295_v62 }
  0xa0   : > { %v363_v0 = vpop.permute.xlu1 %362  ;;  %v359_v1 = vpop.permute.xlu0 %358 }
  0xa1   : > { %vm476_vm13 = vcmp.eq.s32.totalorder %v363_v0, %v2896_v32  ;;  %vm475_vm14 = vcmp.eq.s32.totalorder %v359_v1, %v2896_v32 }
  0xa2   : > { %v2298_v2 = vsel %vm476_vm13, 1.0, %v2807_v37  ;;  %v2297_v4 = vsel %vm475_vm14, 1.0, %v2807_v37  ;;  %2422 = vmatmul.mubr.msk.bf16.gmra.mrb[8].mxu0 %vm607_vm4, %v564_v63 }
  0xa3   : > { %v565_v5 = vpack.c.bf16 %v2298_v2, %v2297_v4 }
  0xa4   : > { %v374_v6 = vpop.permute.xlu1 %373  ;;  %v370_v7 = vpop.permute.xlu0 %369 }
  0xa5   : > { %vm478_vm15 = vcmp.eq.s32.totalorder %v374_v6, %v2896_v32  ;;  %vm477_vm0 = vcmp.eq.s32.totalorder %v370_v7, %v2896_v32  ;;  %2425 = vmatprep.mubr.msk.bf16.mxu0 %vm607_vm4, %v565_v5 }
  0xa6   : > { %v2300_v8 = vsel %vm478_vm15, 1.0, %v2807_v37  ;;  %v2299_v9 = vsel %vm477_vm0, 1.0, %v2807_v37 }
  0xa7   : > { %v566_v10 = vpack.c.bf16 %v2300_v8, %v2299_v9 }
  0xa8   : > { %v385_v11 = vpop.permute.xlu1 %384  ;;  %v381_v12 = vpop.permute.xlu0 %380 }
  0xa9   : > { %vm480_vm1 = vcmp.eq.s32.totalorder %v385_v11, %v2896_v32  ;;  %vm479_vm2 = vcmp.eq.s32.totalorder %v381_v12, %v2896_v32 }
  0xaa   : > { %v2302_v13 = vsel %vm480_vm1, 1.0, %v2807_v37  ;;  %v2301_v14 = vsel %vm479_vm2, 1.0, %v2807_v37  ;;  %2426 = vmatmul.mubr.msk.bf16.gmra.mrb[12].mxu0 %vm607_vm4, %v566_v10  ;;  %vm851_vm2 = vcmp.lt.s32.totalorder %v2867_v3, 7 }
  0xab   : > { %v567_v15 = vpack.c.bf16 %v2302_v13, %v2301_v14 }
  0xac   : > { %v396_v16 = vpop.permute.xlu1 %395  ;;  %v392_v17 = vpop.permute.xlu0 %391 }
  0xad   : > { %vm482_vm3 = vcmp.eq.s32.totalorder %v396_v16, %v2896_v32  ;;  %vm481_vm5 = vcmp.eq.s32.totalorder %v392_v17, %v2896_v32  ;;  %2429 = vmatprep.mubr.msk.bf16.mxu0 %vm607_vm4, %v567_v15 }
  0xae   : > { %v2304_v18 = vsel %vm482_vm3, 1.0, %v2807_v37  ;;  %v2303_v19 = vsel %vm481_vm5, 1.0, %v2807_v37  ;;  %vm916_vm3 = vcmp.lt.s32.totalorder %v2867_v3, 6  ;;  %vm981_vm5 = vcmp.lt.s32.totalorder %v2867_v3, 5 }
  0xaf   : > { %v568_v20 = vpack.c.bf16 %v2304_v18, %v2303_v19 }
  0xb0   : > { %v407_v21 = vpop.permute.xlu1 %406  ;;  %v403_v22 = vpop.permute.xlu0 %402 }
  0xb1   : > { %vm484_vm6 = vcmp.eq.s32.totalorder %v407_v21, %v2896_v32  ;;  %vm483_vm7 = vcmp.eq.s32.totalorder %v403_v22, %v2896_v32  ;;  %v2798_v21 = vld [vmem:[%s4478_s2 + $0x48] sm:$0xff]  }
  0xb2   : > { %v2306_v23 = vsel %vm484_vm6, 1.0, %v2807_v37  ;;  %v2305_v24 = vsel %vm483_vm7, 1.0, %v2807_v37  ;;  %2430 = vmatmul.mubr.msk.bf16.gmra.mrb[16].mxu0 %vm607_vm4, %v568_v20  ;;  %vm1046_vm6 = vcmp.lt.s32.totalorder %v2867_v3, 4  ;;  %vm1463_vm7 = vcmask 261120  }
  0xb3   : > { %v569_v25 = vpack.c.bf16 %v2306_v23, %v2305_v24 }
  0xb4   : > { %v418_v26 = vpop.permute.xlu1 %417  ;;  %v414_v27 = vpop.permute.xlu0 %413 }
  0xb5   : > { %vm486_vm8 = vcmp.eq.s32.totalorder %v418_v26, %v2896_v32  ;;  %vm485_vm9 = vcmp.eq.s32.totalorder %v414_v27, %v2896_v32  ;;  %2433 = vmatprep.mubr.msk.bf16.mxu0 %vm607_vm4, %v569_v25 }
  0xb6   : > { %v2308_v28 = vsel %vm486_vm8, 1.0, %v2807_v37  ;;  %v2307_v29 = vsel %vm485_vm9, 1.0, %v2807_v37  ;;  %vm1528_vm8 = vcmask 785408   ;;  %vm2110_vm9 = vcmask 1042434  }
  0xb7   : > { %v570_v30 = vpack.c.bf16 %v2308_v28, %v2307_v29 }
  0xb8   : > { %v429_v31 = vpop.permute.xlu1 %428  ;;  %v425_v33 = vpop.permute.xlu0 %424 }
  0xb9   : > { %vm488_vm10 = vcmp.eq.s32.totalorder %v429_v31, %v2896_v32  ;;  %vm487_vm11 = vcmp.eq.s32.totalorder %v425_v33, %v2896_v32 }
  0xba   : > { %v2310_v34 = vsel %vm488_vm10, 1.0, %v2807_v37  ;;  %v2309_v35 = vsel %vm487_vm11, 1.0, %v2807_v37  ;;  %2434 = vmatmul.mubr.msk.bf16.gmra.mrb[20].mxu0 %vm607_vm4, %v570_v30  ;;  %vm2113_vm10 = vcmask 1043459   ;;  %vm2116_vm11 = vcmask 1044484  }
  0xbb   : > { %v571_v36 = vpack.c.bf16 %v2310_v34, %v2309_v35 }
  0xbc   : > { %v440_v38 = vpop.permute.xlu1 %439  ;;  %v436_v39 = vpop.permute.xlu0 %435 }
  0xbd   : > { %vm490_vm12 = vcmp.eq.s32.totalorder %v440_v38, %v2896_v32  ;;  %vm489_vm13 = vcmp.eq.s32.totalorder %v436_v39, %v2896_v32  ;;  %2437 = vmatprep.mubr.msk.bf16.mxu0 %vm607_vm4, %v571_v36 }
  0xbe   : > { %v2312_v40 = vsel %vm490_vm12, 1.0, %v2807_v37  ;;  %v2311_v41 = vsel %vm489_vm13, 1.0, %v2807_v37  ;;  %vm2119_vm12 = vcmask 1045509   ;;  %vm2122_vm13 = vcmask 1046534  }
  0xbf   : > { %v572_v42 = vpack.c.bf16 %v2312_v40, %v2311_v41 }
  0xc0   : > { %v451_v43 = vpop.permute.xlu1 %450  ;;  %v447_v44 = vpop.permute.xlu0 %446 }
  0xc1   : > { %vm492_vm14 = vcmp.eq.s32.totalorder %v451_v43, %v2896_v32  ;;  %vm491_vm15 = vcmp.eq.s32.totalorder %v447_v44, %v2896_v32 }
  0xc2   : > { %v2314_v45 = vsel %vm492_vm14, 1.0, %v2807_v37  ;;  %v2313_v46 = vsel %vm491_vm15, 1.0, %v2807_v37  ;;  %2438 = vmatmul.mubr.msk.bf16.gmra.mrb[24].mxu0 %vm607_vm4, %v572_v42  ;;  %vm2125_vm14 = vcmask 1047559  }
  0xc3   : > { %v573_v47 = vpack.c.bf16 %v2314_v45, %v2313_v46 }
  0xc4   : > { %v462_v48 = vpop.permute.xlu1 %461  ;;  %v458_v49 = vpop.permute.xlu0 %457 }
  0xc5   : > { %vm494_vm0 = vcmp.eq.s32.totalorder %v462_v48, %v2896_v32  ;;  %vm493_vm1 = vcmp.eq.s32.totalorder %v458_v49, %v2896_v32  ;;  %2441 = vmatprep.mubr.msk.bf16.mxu0 %vm607_vm4, %v573_v47  ;;  %v2790_v32 = vld [vmem:[%s4478_s2 + $0x8] sm:$0xff]  }
  0xc6   : > { %v2316_v50 = vsel %vm494_vm0, 1.0, %v2807_v37  ;;  %v2315_v51 = vsel %vm493_vm1, 1.0, %v2807_v37  ;;  %1724 = vmatpush1.bf16.msra.mxu0 %v2790_v32  ;;  %2523 = vmatpush1.bf16.msra.mxu1 %v2790_v32  ;;  %v2791_v37 = vld [vmem:[%s4478_s2 + $0x10] sm:$0xff]  }
  0xc7   : > { %v574_v52 = vpack.c.bf16 %v2316_v50, %v2315_v51  ;;  %1725 = vmatprep.subr.bf16.mxu0 %v2808_v54  ;;  %2514 = vmatprep.subr.bf16.mxu1 %v2808_v54 }
  0xca   : > { %2442 = vmatmul.mubr.msk.bf16.gmra.mrb[28].mxu0 %vm607_vm4, %v574_v52  ;;  %2524 = vmatpush1.bf16.msra.mxu1 %v2791_v37 }
  0xcb   : > { %1726 = vmatpush1.bf16.msra.mxu0 %v2791_v37  ;;  %2515 = vmatprep.subr.bf16.mxu1 %v2808_v54 }
  0xcc   : > { %1727 = vmatprep.subr.bf16.mxu0 %v2808_v54 }
  0xce   : > { %2525 = vmatpush1.bf16.msra.mxu1 %v2792_v55 }
  0xcf   : > { %1728 = vmatpush1.bf16.msra.mxu0 %v2792_v55  ;;  %2516 = vmatprep.subr.bf16.mxu1 %v2808_v54 }
  0xd0   : > { %1729 = vmatprep.subr.bf16.mxu0 %v2808_v54 }
  0xd2   : > { %2526 = vmatpush1.bf16.msra.mxu1 %v2793_v56 }
  0xd3   : > { %1730 = vmatpush1.bf16.msra.mxu0 %v2793_v56  ;;  %2517 = vmatprep.subr.bf16.mxu1 %v2808_v54 }
  0xd4   : > { %1731 = vmatprep.subr.bf16.mxu0 %v2808_v54 }
  0xd6   : > { %2527 = vmatpush1.bf16.msra.mxu1 %v2794_v57 }
  0xd7   : > { %1732 = vmatpush1.bf16.msra.mxu0 %v2794_v57  ;;  %2518 = vmatprep.subr.bf16.mxu1 %v2808_v54 }
  0xd8   : > { %1733 = vmatprep.subr.bf16.mxu0 %v2808_v54 }
  0xda   : > { %2528 = vmatpush1.bf16.msra.mxu1 %v2795_v58 }
  0xdb   : > { %1734 = vmatpush1.bf16.msra.mxu0 %v2795_v58  ;;  %2519 = vmatprep.subr.bf16.mxu1 %v2808_v54 }
  0xdc   : > { %1735 = vmatprep.subr.bf16.mxu0 %v2808_v54 }
  0xde   : > { %2529 = vmatpush1.bf16.msra.mxu1 %v2796_v59 }
  0xdf   : > { %1736 = vmatpush1.bf16.msra.mxu0 %v2796_v59  ;;  %2520 = vmatprep.subr.bf16.mxu1 %v2808_v54 }
  0xe0   : > { %1737 = vmatprep.subr.bf16.mxu0 %v2808_v54 }
  0xe2   : > { %2530 = vmatpush1.bf16.msra.mxu1 %v2797_v60 }
  0xe3   : > { %1738 = vmatpush1.bf16.msra.mxu0 %v2797_v60  ;;  %2521 = vmatprep.subr.bf16.mxu1 %v2808_v54 }
  0xe4   : > { %1739 = vmatprep.subr.bf16.mxu0 %v2808_v54 }
  0xe6   : > { %2531 = vmatpush1.bf16.msra.mxu1 %v2798_v21 }
  0xe7   : > { %1740 = vmatpush1.bf16.msra.mxu0 %v2798_v21 }
 0x165   : > { %v3009_v61 = vpop.f32.mrb[0].mxu0 }
 0x166   : > { %4570 = vst [vmem:[#allocation2_spill] sm:$0xff] %v3009_v61  ;;  %v819_v62 = vrot.slane %v3009_v61, 1  ;;  %v886_v63 = vrot.slane %v3009_v61, 2  ;;  %v951_v0 = vrot.slane %v3009_v61, 3  ;;  %v1016_v1 = vrot.slane %v3009_v61, 4  ;;  %v3015_v2 = vpop.f32.mrb[1].mxu0 }
 0x167   : > { %v4488_v4 = vrot.slane %v3015_v2, 1  ;;  %v4489_v5 = vrot.slane %v3015_v2, 2  ;;  %v4487_v6 = vrot.slane %v3015_v2, 3  ;;  %v4484_v7 = vrot.slane %v3015_v2, 4  ;;  %v3021_v8 = vpop.f32.mrb[2].mxu0 }
 0x168   : > { %4571 = vst [vmem:[#allocation3_spill] sm:$0xff] %v3021_v8  ;;  %v820_v9 = vrot.slane %v3021_v8, 1  ;;  %v887_v10 = vrot.slane %v3021_v8, 2  ;;  %v952_v11 = vrot.slane %v3021_v8, 3  ;;  %v4486_v12 = vrot.slane %v3021_v8, 4  ;;  %v3027_v13 = vpop.f32.mrb[3].mxu0 }
 0x169   : > { %4572 = vst [vmem:[#allocation4_spill] sm:$0xff] %v3027_v13  ;;  %v818_v14 = vrot.slane %v3027_v13, 1  ;;  %v885_v15 = vrot.slane %v3027_v13, 2  ;;  %v950_v16 = vrot.slane %v3027_v13, 3  ;;  %v1015_v17 = vrot.slane %v3027_v13, 4 }
 0x16a   : > { %v3035_v18 = vsel %vm916_vm3, %v886_v63, %v887_v10  ;;  %v3039_v19 = vsel %vm851_vm2, %v819_v62, %v820_v9  ;;  %v3043_v20 = vsel %vm981_vm5, %v951_v0, %v952_v11  ;;  %v3052_v22 = vsel %vm1046_vm6, %v1016_v1, %v4486_v12 }
 0x16b   : > { %v946_v23 = vsel %vm916_vm3, %v885_v15, %v886_v63  ;;  %v947_v24 = vsel %vm916_vm3, %v4489_v5, %v885_v15  ;;  %v881_v25 = vsel %vm851_vm2, %v818_v14, %v819_v62  ;;  %v882_v26 = vsel %vm851_vm2, %v4488_v4, %v818_v14 }
 0x16c   : > { %v2550_v27 = vpack.i.bf16 %v946_v23, %v947_v24  ;;  %v2545_v28 = vpack.i.bf16 %v881_v25, %v882_v26  ;;  %v1076_v29 = vsel %vm1046_vm6, %v1015_v17, %v1016_v1  ;;  %v1077_v30 = vsel %vm1046_vm6, %v4484_v7, %v1015_v17 }
 0x16d   : > { %v3072_v31 = vpop.f32.mrb[4].mxu0  ;;  %v1562_v33 = vpack.c.bf16 %v1076_v29, %v1077_v30  ;;  %v1011_v34 = vsel %vm981_vm5, %v950_v16, %v951_v0  ;;  %v1012_v35 = vsel %vm981_vm5, %v4487_v6, %v950_v16 }
 0x16e   : > { %4573 = vst [vmem:[#allocation5_spill] sm:$0xff] %v3072_v31  ;;  %v823_v36 = vrot.slane %v3072_v31, 1  ;;  %v890_v38 = vrot.slane %v3072_v31, 2  ;;  %v955_v39 = vrot.slane %v3072_v31, 3  ;;  %2551 = vrot.lane.b32.xlu1 %v2550_v27, %s2809_s16  ;;  %2546 = vrot.lane.b32.xlu0 %v2545_v28, %s2810_s17  ;;  %v3085_v40 = vpop.f32.mrb[5].mxu0  ;;  %v2555_v32 = vpack.i.bf16 %v1011_v34, %v1012_v35 }
 0x16f   : > { %4574 = vst [vmem:[#allocation6_spill] sm:$0xff] %v3085_v40  ;;  %v821_v42 = vrot.slane %v3085_v40, 1  ;;  %v888_v43 = vrot.slane %v3085_v40, 2  ;;  %v953_v44 = vrot.slane %v3085_v40, 3  ;;  %2347 = vmatprep.mubr.msk.bf16.mxu0 %vm1463_vm7, %v1562_v33  ;;  %v3092_v45 = vpop.f32.mrb[6].mxu0 }
 0x170   : > { %4575 = vst [vmem:[#allocation7_spill] sm:$0xff] %v3092_v45  ;;  %v824_v47 = vrot.slane %v3092_v45, 1  ;;  %v891_v48 = vrot.slane %v3092_v45, 2  ;;  %v956_v49 = vrot.slane %v3092_v45, 3  ;;  %v3098_v50 = vpop.f32.mrb[7].mxu0 }
 0x171   : > { %4576 = vst [vmem:[#allocation8_spill] sm:$0xff] %v3098_v50  ;;  %v822_v52 = vrot.slane %v3098_v50, 1  ;;  %v889_v53 = vrot.slane %v3098_v50, 2  ;;  %v954_v54 = vrot.slane %v3098_v50, 3  ;;  %v3106_v37 = vsel %vm916_vm3, %v887_v10, %v888_v43 }
 0x172   : > { %v3110_v55 = vsel %vm851_vm2, %v820_v9, %v821_v42  ;;  %v3114_v56 = vsel %vm981_vm5, %v952_v11, %v953_v44  ;;  %2556 = vrot.lane.b32.xlu0 %v2555_v32, %s2811_s18  ;;  %v3159_v15 = vsel %vm916_vm3, %v890_v38, %v891_v48  ;;  %v3213_v16 = vsel %vm851_vm2, %v823_v36, %v824_v47 }
 0x173   : > { %v3124_v60 = vsel %vm916_vm3, %v889_v53, %v890_v38  ;;  %v3129_v62 = vsel %vm916_vm3, %v888_v43, %v889_v53  ;;  %v3135_v63 = vsel %vm851_vm2, %v822_v52, %v823_v36  ;;  %v3139_v0 = vsel %vm851_vm2, %v821_v42, %v822_v52  ;;  %4579 = vst [vmem:[#allocation11_spill] sm:$0xff] %v3159_v15 }
 0x174   : > { %v3145_v1 = vsel %vm981_vm5, %v954_v54, %v955_v39  ;;  %v3155_v14 = vsel %vm981_vm5, %v953_v44, %v954_v54  ;;  %4585 = vst [vmem:[#allocation17_spill] sm:$0xff] %v3213_v16  ;;  %v3229_v11 = vsel %vm981_vm5, %v955_v39, %v956_v49 }
 0x175   : > { %4577 = vst [vmem:[#allocation9_spill] sm:$0xff] %v3145_v1  ;;  %v3147_v9 = vpop.f32.mrb[8].mxu0  ;;  %4578 = vst [vmem:[#allocation10_spill] sm:$0xff] %v3155_v14 }
 0x176   : > { %v827_v17 = vrot.slane %v3147_v9, 1  ;;  %v894_v21 = vrot.slane %v3147_v9, 2  ;;  %v4491_v23 = vrot.slane %v3147_v9, 3  ;;  %v3165_v24 = vpop.f32.mrb[9].mxu0  ;;  %v4485_v29 = vrot.slane %v3147_v9, 4  ;;  %4587 = vst [vmem:[#allocation19_spill] sm:$0xff] %v3229_v11 }
 0x177   : > { %4580 = vst [vmem:[#allocation12_spill] sm:$0xff] %v3165_v24  ;;  %v4492_v25 = vrot.slane %v3165_v24, 1  ;;  %v892_v26 = vrot.slane %v3165_v24, 2  ;;  %v4490_v27 = vrot.slane %v3165_v24, 3  ;;  %v3170_v28 = vpop.f32.mrb[10].mxu0 }
 0x178   : > { %4581 = vst [vmem:[#allocation13_spill] sm:$0xff] %v3170_v28  ;;  %v828_v30 = vrot.slane %v3170_v28, 1  ;;  %v895_v33 = vrot.slane %v3170_v28, 2  ;;  %v960_v34 = vrot.slane %v3170_v28, 3  ;;  %v3176_v35 = vpop.f32.mrb[11].mxu0  ;;  %v1025_v38 = vrot.slane %v3170_v28, 4 }
 0x179   : > { %4582 = vst [vmem:[#allocation14_spill] sm:$0xff] %v3176_v35  ;;  %v4493_v43 = vrot.slane %v3176_v35, 1  ;;  %v893_v44 = vrot.slane %v3176_v35, 2  ;;  %v3201_v42 = vsel %vm916_vm3, %v891_v48, %v892_v26  ;;  %v3223_v48 = vsel %vm981_vm5, %v956_v49, %v4490_v27 }
 0x17a   : > { %v1067_v53 = vsel %vm1046_vm6, %v4485_v29, %v1025_v38  ;;  %v937_v54 = vsel %vm916_vm3, %v894_v21, %v895_v33  ;;  %v872_v32 = vsel %vm851_vm2, %v827_v17, %v828_v30  ;;  %v3195_v7 = vsel %vm981_vm5, %v4491_v23, %v960_v34  ;;  %4583 = vst [vmem:[#allocation15_spill] sm:$0xff] %v3201_v42 }
 0x17b   : > { %v3207_v29 = vsel %vm851_vm2, %v824_v47, %v4492_v25  ;;  %4586 = vst [vmem:[#allocation18_spill] sm:$0xff] %v3223_v48  ;;  %v3237_v51 = vsel %vm916_vm3, %v893_v44, %v894_v21  ;;  %v3241_v41 = vsel %vm916_vm3, %v892_v26, %v893_v44  ;;  %v3247_v12 = vsel %vm851_vm2, %v4493_v43, %v827_v17 }
 0x17c   : > { %4584 = vst [vmem:[#allocation16_spill] sm:$0xff] %v3207_v29 }
 0x17d   : > { %v3231_v36 = vpop.f32.mrb[12].mxu0 }
 0x17e   : > { %v898_v47 = vrot.slane %v3231_v36, 2  ;;  %v3253_v21 = vpop.f32.mrb[13].mxu0  ;;  %v4588_v13 = vrot.slane %v3231_v36, 1 }
 0x17f   : > { %v829_v6 = vrot.slane %v3253_v21, 1  ;;  %v896_v26 = vrot.slane %v3253_v21, 2  ;;  %v961_v44 = vrot.slane %v3253_v21, 3  ;;  %v3258_v4 = vpop.f32.mrb[14].mxu0  ;;  %v4498_v17 = vrot.slane %v3253_v21, 4 }
 0x180   : > { %v832_v5 = vrot.slane %v3258_v4, 1  ;;  %v899_v27 = vrot.slane %v3258_v4, 2  ;;  %v964_v52 = vrot.slane %v3258_v4, 3  ;;  %v3265_v23 = vpop.f32.mrb[15].mxu0 }
 0x181   : > { %v830_v43 = vrot.slane %v3265_v23, 1  ;;  %v897_v10 = vrot.slane %v3265_v23, 2  ;;  %v962_v59 = vrot.slane %v3265_v23, 3  ;;  %v1066_v39 = vsel %vm1046_vm6, %v1025_v38, %v4498_v17 }
 0x182   : > { %v936_v58 = vsel %vm916_vm3, %v895_v33, %v896_v26  ;;  %v871_v57 = vsel %vm851_vm2, %v828_v30, %v829_v6  ;;  %v1001_v25 = vsel %vm981_vm5, %v960_v34, %v961_v44  ;;  %v1572_v46 = vpack.c.bf16 %v1066_v39, %v1067_v53 }
 0x183   : > { %v2565_v49 = vpack.i.bf16 %v936_v58, %v937_v54  ;;  %v2560_v61 = vpack.i.bf16 %v871_v57, %v872_v32  ;;  %v2570_v28 = vpack.i.bf16 %v1001_v25, %v3195_v7  ;;  %v869_v11 = vsel %vm851_vm2, %v830_v43, %v4588_v13 }
 0x184   : > { %v870_v38 = vsel %vm851_vm2, %v829_v6, %v830_v43  ;;  %v3290_v33 = vsel %vm916_vm3, %v897_v10, %v898_v47  ;;  %v3294_v30 = vsel %vm916_vm3, %v896_v26, %v897_v10  ;;  %2352 = vmatprep.mubr.msk.bf16.mxu1 %vm1463_vm7, %v1572_v46  ;;  %v4590_v58 = vrot.slane %v3231_v36, 3 }
 0x185   : > { %2566 = vrot.lane.b32.xlu1 %v2565_v49, %s2809_s16  ;;  %v3299_v7 = vpop.f32.mrb[16].mxu0  ;;  %v2585_v13 = vpack.i.bf16 %v869_v11, %v870_v38  ;;  %v2590_v6 = vpack.i.bf16 %v3290_v33, %v3294_v30  ;;  %2561 = vrot.lane.b32.xlu0 %v2560_v61, %s2810_s17  ;;  %v1000_v33 = vsel %vm981_vm5, %v961_v44, %v962_v59  ;;  %v4595_v10 = vrot.slane %v3231_v36, 1 }
 0x186   : > { %4589 = vst [vmem:[#allocation20_spill] sm:$0xff] %v3299_v7  ;;  %v999_v25 = vsel %vm981_vm5, %v962_v59, %v4590_v58  ;;  %v3312_v53 = vpop.f32.mrb[17].mxu0  ;;  %v4594_v58 = vpack.i.bf16 %v3106_v37, %v3035_v18  ;;  %v933_v18 = vsel %vm916_vm3, %v898_v47, %v899_v27  ;;  %v4596_v44 = vrot.slane %v3231_v36, 3 }
 0x187   : > { %4591 = vst [vmem:[#allocation21_spill] sm:$0xff] %v3312_v53  ;;  %v833_v11 = vrot.slane %v3312_v53, 1  ;;  %v900_v54 = vrot.slane %v3312_v53, 2  ;;  %v965_v32 = vrot.slane %v3312_v53, 3  ;;  %v3318_v49 = vpop.f32.mrb[18].mxu0  ;;  %v868_v57 = vsel %vm851_vm2, %v4595_v10, %v832_v5 }
 0x188   : > { %4592 = vst [vmem:[#allocation22_spill] sm:$0xff] %v3318_v49  ;;  %v836_v61 = vrot.slane %v3318_v49, 1  ;;  %v903_v26 = vrot.slane %v3318_v49, 2  ;;  %v968_v38 = vrot.slane %v3318_v49, 3  ;;  %v3324_v30 = vpop.f32.mrb[19].mxu0  ;;  %v4597_v47 = vrot.slane %v3299_v7, 1 }
 0x189   : > { %4593 = vst [vmem:[#allocation23_spill] sm:$0xff] %v3324_v30  ;;  %2581 = vrot.lane.b32.xlu1 %v4594_v58, %s2809_s16  ;;  %v834_v43 = vrot.slane %v3324_v30, 1  ;;  %v901_v39 = vrot.slane %v3324_v30, 2  ;;  %v966_v17 = vrot.slane %v3324_v30, 3  ;;  %2571 = vrot.lane.b32.xlu0 %v2570_v28, %s2811_s18  ;;  %v932_v34 = vsel %vm916_vm3, %v899_v27, %v900_v54 }
 0x18a   : > { %v867_v37 = vsel %vm851_vm2, %v832_v5, %v833_v11  ;;  %v2595_v58 = vpack.i.bf16 %v999_v25, %v1000_v33  ;;  %v2605_v46 = vpack.i.bf16 %v932_v34, %v933_v18  ;;  %v3349_v28 = vsel %vm981_vm5, %v964_v52, %v965_v32 }
 0x18b   : > { %v2600_v59 = vpack.i.bf16 %v867_v37, %v868_v57  ;;  %v3355_v27 = vsel %vm981_vm5, %v4596_v44, %v964_v52  ;;  %v3361_v25 = vsel %vm851_vm2, %v834_v43, %v4597_v47  ;;  %v3365_v5 = vsel %vm851_vm2, %v833_v11, %v834_v43 }
 0x18c   : > { %v2620_v52 = vpack.i.bf16 %v3361_v25, %v3365_v5  ;;  %v4599_v34 = vrot.slane %v3299_v7, 3  ;;  %v3382_v43 = vsel %vm981_vm5, %v965_v32, %v966_v17 }
 0x18d   : > { %2586 = vrot.lane.b32.xlu1 %v2585_v13, %s2810_s17  ;;  %v3368_v10 = vpop.f32.mrb[20].mxu0  ;;  %v4600_v13 = vpack.i.bf16 %v3110_v55, %v3039_v19 }
 0x18e   : > { %4598 = vst [vmem:[#allocation24_spill] sm:$0xff] %v3368_v10  ;;  %v3378_v33 = vsel %vm981_vm5, %v966_v17, %v4599_v34  ;;  %v3392_v47 = vpop.f32.mrb[21].mxu0 }
 0x18f   : > { %2576 = vrot.lane.b32.xlu0 %v4600_v13, %s2810_s17  ;;  %4601 = vst [vmem:[#allocation25_spill] sm:$0xff] %v3392_v47  ;;  %v837_v25 = vrot.slane %v3392_v47, 1  ;;  %v904_v17 = vrot.slane %v3392_v47, 2  ;;  %v969_v32 = vrot.slane %v3392_v47, 3  ;;  %v3398_v19 = vpop.f32.mrb[22].mxu0  ;;  %v2630_v48 = vpack.i.bf16 %v3378_v33, %v3382_v43 }
 0x190   : > { %4602 = vst [vmem:[#allocation26_spill] sm:$0xff] %v3398_v19  ;;  %v840_v55 = vrot.slane %v3398_v19, 1  ;;  %v907_v34 = vrot.slane %v3398_v19, 2  ;;  %v3404_v18 = vpop.f32.mrb[23].mxu0  ;;  %v4604_v13 = vrot.slane %v3299_v7, 2  ;;  %v4614_v47 = vpack.i.bf16 %v3349_v28, %v3355_v27 }
 0x191   : > { %4603 = vst [vmem:[#allocation27_spill] sm:$0xff] %v3404_v18  ;;  %2596 = vrot.lane.b32.xlu1 %v2595_v58, %s2811_s18  ;;  %v838_v57 = vrot.slane %v3404_v18, 1  ;;  %v905_v37 = vrot.slane %v3404_v18, 2  ;;  %v970_v5 = vrot.slane %v3404_v18, 3  ;;  %v3422_v58 = vsel %vm916_vm3, %v900_v54, %v901_v39 }
 0x192   : > { %v3418_v44 = vsel %vm916_vm3, %v901_v39, %v4604_v13  ;;  %v3426_v16 = vsel %vm916_vm3, %v903_v26, %v904_v17  ;;  %v4605_v11 = vmov %v4604_v13  ;;  %v3438_v43 = vsel %vm851_vm2, %v836_v61, %v837_v25 }
 0x193   : > { %2591 = vrot.lane.b32.xlu0 %v2590_v6, %s2809_s16  ;;  %v3434_v33 = vsel %vm916_vm3, %v4605_v11, %v903_v26  ;;  %v4606_v54 = vrot.slane %v3299_v7, 1  ;;  %v3452_v26 = vsel %vm981_vm5, %v968_v38, %v969_v32  ;;  %v4607_v11 = vrot.slane %v3299_v7, 3 }
 0x194   : > { %v4609_v13 = vrot.slane %v3368_v10, 1  ;;  %v3473_v14 = vsel %vm851_vm2, %v837_v25, %v838_v57  ;;  %v3513_v1 = vsel %vm981_vm5, %v969_v32, %v970_v5  ;;  %v4623_v28 = vrot.slane %v3398_v19, 3 }
 0x195   : > { %v3444_v39 = vsel %vm851_vm2, %v4606_v54, %v836_v61  ;;  %v3458_v29 = vsel %vm981_vm5, %v4607_v11, %v968_v38  ;;  %2606 = vrot.lane.b32.xlu1 %v2605_v46, %s2809_s16  ;;  %v3461_v61 = vpop.f32.mrb[24].mxu0  ;;  %v4610_v38 = vrot.slane %v3368_v10, 3 }
 0x196   : > { %4608 = vst [vmem:[#allocation28_spill] sm:$0xff] %v3461_v61  ;;  %v3469_v6 = vsel %vm851_vm2, %v838_v57, %v4609_v13  ;;  %v3486_v15 = vpop.f32.mrb[25].mxu0  ;;  %v4619_v32 = vmov %v4609_v13 }
 0x197   : > { %v3479_v46 = vsel %vm981_vm5, %v970_v5, %v4610_v38  ;;  %2601 = vrot.lane.b32.xlu0 %v2600_v59, %s2810_s17  ;;  %4611 = vst [vmem:[#allocation29_spill] sm:$0xff] %v3486_v15  ;;  %v841_v57 = vrot.slane %v3486_v15, 1  ;;  %v908_v25 = vrot.slane %v3486_v15, 2  ;;  %v973_v42 = vrot.slane %v3486_v15, 3  ;;  %v3492_v45 = vpop.f32.mrb[26].mxu0 }
 0x198   : > { %4612 = vst [vmem:[#allocation30_spill] sm:$0xff] %v3492_v45  ;;  %v844_v59 = vrot.slane %v3492_v45, 1  ;;  %v911_v54 = vrot.slane %v3492_v45, 2  ;;  %v3498_v11 = vpop.f32.mrb[27].mxu0  ;;  %v3523_v15 = vsel %vm916_vm3, %v904_v17, %v905_v37  ;;  %v3537_v5 = vsel %vm851_vm2, %v4619_v32, %v840_v55 }
 0x199   : > { %4613 = vst [vmem:[#allocation31_spill] sm:$0xff] %v3498_v11  ;;  %2621 = vrot.lane.b32.xlu1 %v2620_v52, %s2810_s17  ;;  %v842_v18 = vrot.slane %v3498_v11, 1  ;;  %v909_v49 = vrot.slane %v3498_v11, 2  ;;  %v974_v38 = vrot.slane %v3498_v11, 3  ;;  %v4615_v52 = vrot.slane %v3368_v10, 2  ;;  %4617 = vst [vmem:[#allocation33_spill] sm:$0xff] %v3523_v15 }
 0x19a   : > { %4620 = vst [vmem:[#allocation35_spill] sm:$0xff] %v3537_v5  ;;  %v3543_v17 = vsel %vm916_vm3, %v907_v34, %v908_v25  ;;  %v3555_v13 = vsel %vm981_vm5, %v4623_v28, %v973_v42  ;;  %v4626_v11 = vrot.slane %v3368_v10, 3  ;;  %v4628_v32 = vpack.i.bf16 %v3114_v56, %v3043_v20 }
 0x19b   : > { %2611 = vrot.lane.b32.xlu0 %v4614_v47, %s2811_s18  ;;  %v3519_v50 = vsel %vm916_vm3, %v905_v37, %v4615_v52  ;;  %v3531_v47 = vsel %vm851_vm2, %v840_v55, %v841_v57  ;;  %4621 = vst [vmem:[#allocation36_spill] sm:$0xff] %v3543_v17  ;;  %v3549_v27 = vsel %vm916_vm3, %v4615_v52, %v907_v34  ;;  %v4627_v52 = vrot.slane %v3461_v61, 1 }
 0x19c   : > { %4616 = vst [vmem:[#allocation32_spill] sm:$0xff] %v3519_v50  ;;  %4618 = vst [vmem:[#allocation34_spill] sm:$0xff] %v3531_v47  ;;  %v4625_v37 = vmov %v4623_v28  ;;  %v4631_v5 = vpack.i.bf16 %v3426_v16, %v3434_v33  ;;  %v4632_v17 = vpack.i.bf16 %v3418_v44, %v3422_v58  ;;  %v4633_v33 = vrot.slane %v3461_v61, 2 }
 0x19d   : > { %4622 = vst [vmem:[#allocation37_spill] sm:$0xff] %v3549_v27  ;;  %2631 = vrot.lane.b32.xlu1 %v2630_v48, %s2811_s18  ;;  %v3558_v55 = vpop.f32.mrb[28].mxu0  ;;  %v3568_v34 = vsel %vm981_vm5, %v4626_v11, %v4625_v37  ;;  %v3574_v28 = vsel %vm851_vm2, %v842_v18, %v4627_v52  ;;  %v3578_v48 = vsel %vm851_vm2, %v841_v57, %v842_v18  ;;  %v4636_v44 = vrot.slane %v3461_v61, 3 }
 0x19e   : > { %4624 = vst [vmem:[#allocation38_spill] sm:$0xff] %v3558_v55  ;;  %v847_v27 = vrot.slane %v3558_v55, 1  ;;  %v914_v11 = vrot.slane %v3558_v55, 2  ;;  %v979_v37 = vrot.slane %v3558_v55, 3  ;;  %v3588_v15 = vpop.f32.mrb[29].mxu0  ;;  %v4649_v16 = vrot.slane %v3165_v24, 3 }
 0x19f   : > { %2616 = vrot.lane.b32.xlu0 %v4628_v32, %s2811_s18  ;;  %4629 = vst [vmem:[#allocation39_spill] sm:$0xff] %v3588_v15  ;;  %v845_v52 = vrot.slane %v3588_v15, 1  ;;  %v912_v18 = vrot.slane %v3588_v15, 2  ;;  %v977_v57 = vrot.slane %v3588_v15, 3  ;;  %v3594_v20 = vpop.f32.mrb[30].mxu0  ;;  %v3626_v15 = vsel %vm916_vm3, %v908_v25, %v909_v49 }
 0x1a0   : > { %4630 = vst [vmem:[#allocation40_spill] sm:$0xff] %v3594_v20  ;;  %v848_v56 = vrot.slane %v3594_v20, 1  ;;  %v915_v32 = vrot.slane %v3594_v20, 2  ;;  %v980_v19 = vrot.slane %v3594_v20, 3  ;;  %v3600_v55 = vpop.f32.mrb[31].mxu0  ;;  %4635 = vst [vmem:[#allocation42_spill] sm:$0xff] %v3626_v15  ;;  %v3634_v58 = vsel %vm981_vm5, %v974_v38, %v4636_v44 }
 0x1a1   : > { %2641 = vrot.lane.b32.xlu1 %v4631_v5, %s2809_s16  ;;  %v846_v47 = vrot.slane %v3600_v55, 1  ;;  %v913_v10 = vrot.slane %v3600_v55, 2  ;;  %v978_v20 = vrot.slane %v3600_v55, 3  ;;  %v3622_v5 = vsel %vm916_vm3, %v909_v49, %v4633_v33 }
 0x1a2   : > { %4634 = vst [vmem:[#allocation41_spill] sm:$0xff] %v3622_v5  ;;  %v3642_v33 = vsel %vm851_vm2, %v844_v59, %v845_v52  ;;  %v4637_v25 = vrot.slane %v3461_v61, 1  ;;  %v3654_v44 = vsel %vm916_vm3, %v911_v54, %v912_v18  ;;  %v4639_v49 = vpack.i.bf16 %v3124_v60, %v3129_v62  ;;  %v4748_v3 = vld [vmem:[#allocation36_spill] sm:$0xff] }
 0x1a3   : > { %2626 = vrot.lane.b32.xlu0 %v4632_v17, %s2809_s16  ;;  %v3638_v17 = vsel %vm981_vm5, %v973_v42, %v974_v38  ;;  %v4638_v42 = vrot.slane %v3461_v61, 2  ;;  %v4640_v15 = vrot.slane %v3176_v35, 1  ;;  %v4641_v5 = vrot.slane %v3165_v24, 1 }
 0x1a4   : > { %v3650_v50 = vsel %vm851_vm2, %v4637_v25, %v844_v59  ;;  %v4642_v60 = vpack.i.bf16 %v3438_v43, %v3444_v39  ;;  %v4645_v25 = vrot.slane %v3461_v61, 3  ;;  %v3702_v43 = vsel %vm916_vm3, %v913_v10, %v914_v11 }
 0x1a5   : > { %v3660_v38 = vsel %vm916_vm3, %v4638_v42, %v911_v54  ;;  %2656 = vrot.lane.b32.xlu1 %v4639_v49, %s2809_s16  ;;  %v3678_v54 = vsel %vm851_vm2, %v4641_v5, %v4640_v15  ;;  %v4643_v49 = vrot.slane %v3492_v45, 3  ;;  %v3708_v5 = vsel %vm916_vm3, %v912_v18, %v913_v10 }
 0x1a6   : > { %v4646_v62 = vrot.slane %v3147_v9, 3  ;;  %v4647_v39 = vrot.slane %v3176_v35, 3 }
 0x1a7   : > { %2636 = vrot.lane.b32.xlu0 %v4642_v60, %s2810_s17  ;;  %v3690_v42 = vsel %vm981_vm5, %v4643_v49, %v977_v57  ;;  %v4644_v59 = vmov %v4643_v49  ;;  %v3712_v60 = vsel %vm851_vm2, %v846_v47, %v847_v27  ;;  %v3716_v49 = vsel %vm851_vm2, %v845_v52, %v846_v47 }
 0x1a8   : > { %v3698_v15 = vsel %vm981_vm5, %v4645_v25, %v4644_v59  ;;  %v3728_v10 = vsel %vm981_vm5, %v4647_v39, %v4646_v62  ;;  %v4648_v18 = vmov %v4647_v39  ;;  %v4650_v52 = vpack.i.bf16 %v3469_v6, %v3473_v14 }
 0x1a9   : > { %v3736_v47 = vsel %vm981_vm5, %v4649_v16, %v4648_v18  ;;  %v3746_v62 = vsel %vm981_vm5, %v978_v20, %v979_v37  ;;  %v3750_v39 = vsel %vm981_vm5, %v977_v57, %v978_v20  ;;  %v3754_v16 = vsel %vm916_vm3, %v914_v11, %v915_v32 }
 0x1aa   : > { %2661 = vrot.lane.b32.xlu1 %v4650_v52, %s2810_s17  ;;  %v4651_v14 = vpack.i.bf16 %v3452_v26, %v3458_v29  ;;  %v4652_v18 = vrot.slane %v3015_v2, 2  ;;  %v3770_v57 = vsel %vm851_vm2, %v847_v27, %v848_v56  ;;  %v4653_v11 = vrot.slane %v3015_v2, 1 }
 0x1ab   : > { %v4658_v26 = vrot.slane %v3265_v23, 4  ;;  %v4663_v6 = vrot.slane %v3258_v4, 4 }
 0x1ac   : > { %2646 = vrot.lane.b32.xlu0 %v4651_v14, %s2811_s18  ;;  %v3766_v52 = vsel %vm916_vm3, %v915_v32, %v4652_v18  ;;  %v3776_v20 = vsel %vm851_vm2, %v848_v56, %v4653_v11  ;;  %v3784_v32 = vsel %vm981_vm5, %v979_v37, %v980_v19  ;;  %v4654_v14 = vrot.slane %v3015_v2, 3 }
 0x1ad   : > { %v4655_v18 = vrot.slane %v3085_v40, 4  ;;  %v4656_v11 = vrot.slane %v3021_v8, 4  ;;  %v4657_v37 = vrot.slane %v3231_v36, 4  ;;  %v4683_v8 = vld [vmem:[#allocation22_spill] sm:$0xff] }
 0x1ae   : > { %v3790_v27 = vsel %vm981_vm5, %v980_v19, %v4654_v14  ;;  %v4659_v19 = vmov %v4658_v26  ;;  %v4660_v14 = vrot.slane %v3253_v21, 4 }
 0x1af   : > { %v3800_v29 = vsel %vm1046_vm6, %v4656_v11, %v4655_v18  ;;  %v3808_v59 = vsel %vm1046_vm6, %v4658_v26, %v4657_v37  ;;  %v4661_v18 = vpack.i.bf16 %v3479_v46, %v3513_v1  ;;  %v4662_v37 = vrot.slane %v3312_v53, 4 }
 0x1b0   : > { %v3816_v56 = vsel %vm1046_vm6, %v4660_v14, %v4659_v19  ;;  %v4665_v19 = vmov %v4663_v6  ;;  %v4666_v14 = vrot.slane %v3231_v36, 4  ;;  %v4668_v46 = vpack.i.bf16 %v3135_v63, %v3139_v0  ;;  %v4676_v0 = vld [vmem:[#allocation8_spill] sm:$0xff] }
 0x1b1   : > { %2676 = vrot.lane.b32.xlu1 %v4661_v18, %s2811_s18  ;;  %v3832_v25 = vsel %vm1046_vm6, %v4663_v6, %v4662_v37  ;;  %v4669_v26 = vrot.slane %v3299_v7, 4  ;;  %v4670_v6 = vrot.slane %v3324_v30, 4  ;;  %v4675_v63 = vrot.slane %v3072_v31, 4 }
 0x1b2   : > { %4664 = vst [vmem:[#allocation43_spill] sm:$0xff] %v3832_v25  ;;  %v3840_v1 = vsel %vm1046_vm6, %v4666_v14, %v4665_v19  ;;  %2651 = vrot.lane.b32.xlu0 %v4668_v46, %s2810_s17  ;;  %v4673_v19 = vrot.slane %v3312_v53, 4  ;;  %v4677_v46 = vrot.slane %v4676_v0, 4  ;;  %v4679_v30 = vrot.slane %v3085_v40, 4  ;;  %v4689_v40 = vld [vmem:[#allocation24_spill] sm:$0xff] }
 0x1b3   : > { %4667 = vst [vmem:[#allocation44_spill] sm:$0xff] %v3840_v1  ;;  %v3854_v37 = vsel %vm1046_vm6, %v4670_v6, %v4669_v26  ;;  %v4672_v11 = vmov %v4670_v6  ;;  %v4684_v1 = vrot.slane %v4683_v8, 4  ;;  %v4690_v0 = vrot.slane %v4689_v40, 4 }
 0x1b4   : > { %4671 = vst [vmem:[#allocation45_spill] sm:$0xff] %v3854_v37  ;;  %v3862_v14 = vsel %vm1046_vm6, %v4673_v19, %v4672_v11  ;;  %v3870_v18 = vsel %vm1046_vm6, %v4677_v46, %v4675_v63  ;;  %v4678_v6 = vmov %v4677_v46  ;;  %v4681_v11 = vld [vmem:[#allocation25_spill] sm:$0xff]  ;;  %v4687_v46 = vmov %v4669_v26 }
 0x1b5   : > { %4674 = vst [vmem:[#allocation46_spill] sm:$0xff] %v3862_v14  ;;  %v3880_v53 = vsel %vm1046_vm6, %v4679_v30, %v4678_v6  ;;  %v4682_v19 = vrot.slane %v4681_v11, 4  ;;  %v4686_v63 = vmov %v4684_v1  ;;  %v4691_v14 = vld [vmem:[#allocation27_spill] sm:$0xff]  ;;  %v4695_v7 = vrot.slane %v4681_v11, 4 }
 0x1b6   : > { %4680 = vst [vmem:[#allocation47_spill] sm:$0xff] %v3880_v53  ;;  %v3896_v26 = vsel %vm1046_vm6, %v4687_v46, %v4686_v63  ;;  %v4692_v37 = vrot.slane %v4691_v14, 4  ;;  %v4697_v46 = vld [vmem:[#allocation34_spill] sm:$0xff]  ;;  %v4698_v30 = vld [vmem:[#allocation35_spill] sm:$0xff] }
 0x1b7   : > { %v3888_v25 = vsel %vm1046_vm6, %v4684_v1, %v4682_v19  ;;  %4688 = vst [vmem:[#allocation49_spill] sm:$0xff] %v3896_v26  ;;  %v4699_v6 = vpack.i.bf16 %v4697_v46, %v4698_v30  ;;  %v4706_v30 = vrot.slane %v3165_v24, 4 }
 0x1b8   : > { %4685 = vst [vmem:[#allocation48_spill] sm:$0xff] %v3888_v25  ;;  %v3908_v1 = vsel %vm1046_vm6, %v4692_v37, %v4690_v0  ;;  %v4694_v19 = vmov %v4692_v37  ;;  %v4700_v25 = vld [vmem:[#allocation29_spill] sm:$0xff]  ;;  %v4702_v37 = vld [vmem:[#allocation26_spill] sm:$0xff] }
 0x1b9   : > { %4693 = vst [vmem:[#allocation50_spill] sm:$0xff] %v3908_v1  ;;  %v3916_v63 = vsel %vm1046_vm6, %v4695_v7, %v4694_v19  ;;  %2681 = vrot.lane.b32.xlu1 %v4699_v6, %s2810_s17  ;;  %v4701_v8 = vrot.slane %v4700_v25, 4  ;;  %v4703_v0 = vrot.slane %v4702_v37, 4  ;;  %v4705_v7 = vrot.slane %v4689_v40, 4  ;;  %v4707_v6 = vld [vmem:[#allocation7_spill] sm:$0xff] }
 0x1ba   : > { %4696 = vst [vmem:[#allocation51_spill] sm:$0xff] %v3916_v63  ;;  %v4708_v46 = vrot.slane %v4707_v6, 4  ;;  %v4709_v63 = vld [vmem:[#allocation32_spill] sm:$0xff]  ;;  %v4714_v1 = vrot.slane %v3461_v61, 4  ;;  %v4720_v40 = vld [vmem:[#allocation39_spill] sm:$0xff]  ;;  %v4722_v6 = vrot.slane %v3492_v45, 4 }
 0x1bb   : > { %v3930_v14 = vsel %vm1046_vm6, %v4703_v0, %v4701_v8  ;;  %v4704_v11 = vmov %v4703_v0  ;;  %v4710_v8 = vld [vmem:[#allocation33_spill] sm:$0xff] }
 0x1bc   : > { %v3938_v19 = vsel %vm1046_vm6, %v4705_v7, %v4704_v11  ;;  %v3946_v26 = vsel %vm1046_vm6, %v4708_v46, %v4706_v30  ;;  %v4711_v0 = vpack.i.bf16 %v4709_v63, %v4710_v8  ;;  %v4712_v37 = vmov %v4708_v46  ;;  %v4715_v30 = vld [vmem:[#allocation31_spill] sm:$0xff] }
 0x1bd   : > { %v4713_v11 = vrot.slane %v3072_v31, 4  ;;  %v4716_v46 = vrot.slane %v4715_v30, 4  ;;  %v4718_v8 = vrot.slane %v4700_v25, 4  ;;  %v4721_v31 = vrot.slane %v4720_v40, 4 }
 0x1be   : > { %2666 = vrot.lane.b32.xlu0 %v4711_v0, %s2809_s16  ;;  %v4725_v25 = vrot.slane %v3461_v61, 4 }
 0x1bf   : > { %v3960_v7 = vsel %vm1046_vm6, %v4713_v11, %v4712_v37  ;;  %v3968_v53 = vsel %vm1046_vm6, %v4716_v46, %v4714_v1  ;;  %v4717_v63 = vmov %v4716_v46  ;;  %v3988_v1 = vsel %vm1046_vm6, %v4722_v6, %v4721_v31 }
 0x1c0   : > { %v3976_v0 = vsel %vm1046_vm6, %v4718_v8, %v4717_v63  ;;  %4723 = vst [vmem:[#allocation35_spill] sm:$0xff] %v3988_v1  ;;  %v4724_v46 = vmov %v4722_v6  ;;  %v4727_v11 = vrot.slane %v3147_v9, 4  ;;  %v4728_v37 = vrot.slane %v3176_v35, 4  ;;  %v4739_v1 = vld [vmem:[#allocation40_spill] sm:$0xff] }
 0x1c1   : > { %4719 = vst [vmem:[#allocation34_spill] sm:$0xff] %v3976_v0  ;;  %v3996_v63 = vsel %vm1046_vm6, %v4725_v25, %v4724_v46  ;;  %v4730_v6 = vrot.slane %v3165_v24, 4  ;;  %v4731_v25 = vld [vmem:[#allocation38_spill] sm:$0xff]  ;;  %v4733_v8 = vrot.slane %v3600_v55, 4  ;;  %v4740_v0 = vrot.slane %v4739_v1, 4  ;;  %v4744_v24 = vld [vmem:[#allocation9_spill] sm:$0xff] }
 0x1c2   : > { %4726 = vst [vmem:[#allocation32_spill] sm:$0xff] %v3996_v63  ;;  %v4006_v30 = vsel %vm1046_vm6, %v4728_v37, %v4727_v11  ;;  %v4729_v31 = vmov %v4728_v37  ;;  %v4732_v46 = vrot.slane %v4731_v25, 4  ;;  %v4734_v63 = vld [vmem:[#allocation15_spill] sm:$0xff] }
 0x1c3   : > { %v4014_v61 = vsel %vm1046_vm6, %v4730_v6, %v4729_v31  ;;  %v4735_v37 = vld [vmem:[#allocation11_spill] sm:$0xff]  ;;  %v4737_v35 = vmov %v4733_v8  ;;  %v4738_v31 = vrot.slane %v4720_v40, 4 }
 0x1c4   : > { %v4022_v45 = vsel %vm1046_vm6, %v4733_v8, %v4732_v46  ;;  %v4736_v11 = vpack.i.bf16 %v4734_v63, %v4735_v37  ;;  %v4741_v8 = vmov %v4732_v46  ;;  %v4742_v63 = vrot.slane %v3015_v2, 4 }
 0x1c5   : > { %v4036_v6 = vsel %vm1046_vm6, %v4738_v31, %v4737_v35  ;;  %v4044_v46 = vsel %vm1046_vm6, %v4741_v8, %v4740_v0  ;;  %v4743_v37 = vmov %v4740_v0  ;;  %v4745_v35 = vld [vmem:[#allocation10_spill] sm:$0xff]  ;;  %v4747_v8 = vpack.i.bf16 %v3555_v13, %v3568_v34  ;;  %v4756_v34 = vld [vmem:[#allocation41_spill] sm:$0xff] }
 0x1c6   : > { %2696 = vrot.lane.b32.xlu1 %v4736_v11, %s2809_s16  ;;  %v4052_v11 = vsel %vm1046_vm6, %v4743_v37, %v4742_v63  ;;  %v4746_v31 = vpack.i.bf16 %v4744_v24, %v4745_v35  ;;  %v4749_v63 = vld [vmem:[#allocation37_spill] sm:$0xff]  ;;  %v4751_v24 = vpack.i.bf16 %v3574_v28, %v3578_v48  ;;  %v4752_v35 = vld [vmem:[#allocation16_spill] sm:$0xff]  ;;  %v4755_v13 = vpack.i.bf16 %v3634_v58, %v3638_v17  ;;  %v4760_v48 = vld [vmem:[#allocation18_spill] sm:$0xff] }
 0x1c7   : > { %v1592_v0 = vpack.c.bf16 %v4052_v11, %v4044_v46  ;;  %v4750_v37 = vpack.i.bf16 %v4748_v3, %v4749_v63  ;;  %v4759_v28 = vpack.i.bf16 %v3642_v33, %v3650_v50  ;;  %v4761_v63 = vld [vmem:[#allocation19_spill] sm:$0xff]  ;;  %v4763_v58 = vpack.i.bf16 %v3237_v51, %v3241_v41 }
 0x1c8   : > { %2671 = vrot.lane.b32.xlu0 %v4746_v31, %s2811_s18  ;;  %v4753_v31 = vld [vmem:[#allocation17_spill] sm:$0xff]  ;;  %v4764_v17 = vpack.i.bf16 %v3654_v44, %v3660_v38  ;;  %v4765_v50 = vpack.i.bf16 %v3690_v42, %v3698_v15  ;;  %v4766_v33 = vpack.i.bf16 %v3247_v12, %v3678_v54  ;;  %v4767_v41 = vpack.i.bf16 %v3712_v60, %v3716_v49  ;;  %v2068_v46 = vld [vmem:[%s4481_s5 + $0x8] sm:$0xff] }
 0x1c9   : > { %v4754_v25 = vpack.i.bf16 %v4752_v35, %v4753_v31  ;;  %v4768_v51 = vpack.i.bf16 %v3702_v43, %v3708_v5  ;;  %v4769_v44 = vpack.i.bf16 %v3746_v62, %v3750_v39  ;;  %v4770_v12 = vpack.i.bf16 %v3728_v10, %v3736_v47  ;;  %v4774_v47 = vld [vmem:[#allocation4_spill] sm:$0xff] }
 0x1ca   : > { %2701 = vrot.lane.b32.xlu1 %v4747_v8, %s2811_s18  ;;  %v4757_v8 = vld [vmem:[#allocation42_spill] sm:$0xff]  ;;  %v4771_v38 = vpack.i.bf16 %v3776_v20, %v3770_v57  ;;  %v4772_v54 = vpack.i.bf16 %v3766_v52, %v3754_v16  ;;  %v4773_v42 = vpack.i.bf16 %v3790_v27, %v3784_v32  ;;  %v4775_v35 = vpack.c.bf16 %v3800_v29, %v3052_v22 }
 0x1cb   : > { %v4758_v3 = vpack.i.bf16 %v4756_v34, %v4757_v8 }
 0x1cc   : > { %2686 = vrot.lane.b32.xlu0 %v4750_v37, %s2809_s16  ;;  %v4762_v37 = vpack.i.bf16 %v4760_v48, %v4761_v63 }
 0x1ce   : > { %2706 = vrot.lane.b32.xlu1 %v4751_v24, %s2810_s17 }
 0x1d0   : > { %2691 = vrot.lane.b32.xlu0 %v4754_v25, %s2810_s17 }
 0x1d2   : > { %2721 = vrot.lane.b32.xlu1 %v4755_v13, %s2811_s18 }
 0x1d4   : > { %2711 = vrot.lane.b32.xlu0 %v4758_v3, %s2809_s16 }
 0x1d6   : > { %2726 = vrot.lane.b32.xlu1 %v4759_v28, %s2810_s17  ;;  %v4776_v28 = vld [vmem:[#allocation13_spill] sm:$0xff] }
 0x1d8   : > { %2716 = vrot.lane.b32.xlu0 %v4762_v37, %s2811_s18 }
 0x1da   : > { %2741 = vrot.lane.b32.xlu1 %v4763_v58, %s2809_s16 }
 0x1dc   : > { %2731 = vrot.lane.b32.xlu0 %v4764_v17, %s2809_s16 }
 0x1de   : > { %2746 = vrot.lane.b32.xlu1 %v4765_v50, %s2811_s18 }
 0x1e0   : > { %2736 = vrot.lane.b32.xlu0 %v4766_v33, %s2810_s17  ;;  %v2547_v15 = vpop.permute.xlu0 %2546  ;;  %v2552_v43 = vpop.permute.xlu1 %2551 }
 0x1e1   : > { %v2549_v5 = vunpack.i.h.bf16 %v2547_v15  ;;  %v2548_v60 = vunpack.i.l.bf16 %v2547_v15  ;;  %v2554_v49 = vunpack.i.h.bf16 %v2552_v43  ;;  %v2553_v10 = vunpack.i.l.bf16 %v2552_v43 }
 0x1e2   : > { %2751 = vrot.lane.b32.xlu1 %v4767_v41, %s2810_s17 }
 0x1e3   : > { %v1465_v62 = vsel %vm1463_vm7, %v4774_v47, %v2549_v5  ;;  %v1464_v39 = vsel %vm1463_vm7, %v3015_v2, %v2548_v60 }
 0x1e4   : > { %2756 = vrot.lane.b32.xlu0 %v4768_v51, %s2809_s16  ;;  %v2557_v16 = vpop.permute.xlu0 %2556  ;;  %v1496_v20 = vsel %vm607_vm4, %v1464_v39, %v2553_v10  ;;  %v1497_v32 = vsel %vm607_vm4, %v1465_v62, %v2554_v49 }
 0x1e5   : > { %v2559_v52 = vunpack.i.h.bf16 %v2557_v16  ;;  %v2558_v57 = vunpack.i.l.bf16 %v2557_v16 }
 0x1e6   : > { %2766 = vrot.lane.b32.xlu1 %v4769_v44, %s2811_s18 }
 0x1e7   : > { %v1529_v27 = vsel %vm1528_vm8, %v1496_v20, %v2558_v57  ;;  %v1530_v25 = vsel %vm1528_vm8, %v1497_v32, %v2559_v52 }
 0x1e8   : > { %2761 = vrot.lane.b32.xlu0 %v4770_v12, %s2811_s18  ;;  %v1561_v24 = vpack.c.bf16 %v1530_v25, %v1529_v27 }
 0x1ea   : > { %2771 = vrot.lane.b32.xlu1 %v4771_v38, %s2810_s17  ;;  %1754 = vmatmul.mubr.bf16.vlgmr.msra.gmra.mrb[32].mxu0 %v1561_v24 }
 0x1eb   : > { %2348 = vmatprep.mubr.msk.bf16.mxu0 %vm1463_vm7, %v4775_v35 }
 0x1ec   : > { %2776 = vrot.lane.b32.xlu0 %v4772_v54, %s2809_s16 }
 0x1ee   : > { %2781 = vrot.lane.b32.xlu1 %v4773_v42, %s2811_s18 }
 0x1f7   : > { %v2567_v2 = vpop.permute.xlu1 %2566  ;;  %v2562_v31 = vpop.permute.xlu0 %2561 }
 0x1f8   : > { %v2564_v13 = vunpack.i.h.bf16 %v2562_v31  ;;  %v2563_v34 = vunpack.i.l.bf16 %v2562_v31  ;;  %v2569_v8 = vunpack.i.h.bf16 %v2567_v2  ;;  %v2568_v3 = vunpack.i.l.bf16 %v2567_v2 }
 0x1fa   : > { %v1475_v48 = vsel %vm1463_vm7, %v4776_v28, %v2564_v13  ;;  %v1474_v63 = vsel %vm1463_vm7, %v3147_v9, %v2563_v34  ;;  %v4777_v9 = vpack.c.bf16 %v3808_v59, %v3816_v56  ;;  %v4778_v13 = vld [vmem:[#allocation43_spill] sm:$0xff]  ;;  %v4779_v34 = vld [vmem:[#allocation44_spill] sm:$0xff] }
 0x1fb   : > { %v2582_v37 = vpop.permute.xlu1 %2581  ;;  %v2572_v58 = vpop.permute.xlu0 %2571  ;;  %v1506_v22 = vsel %vm607_vm4, %v1474_v63, %v2568_v3  ;;  %v1507_v29 = vsel %vm607_vm4, %v1475_v48, %v2569_v8  ;;  %v4780_v8 = vpack.c.bf16 %v4778_v13, %v4779_v34 }
 0x1fc   : > { %v2574_v17 = vunpack.i.h.bf16 %v2572_v58  ;;  %v2573_v50 = vunpack.i.l.bf16 %v2572_v58  ;;  %v4781_v58 = vld [vmem:[#allocation3_spill] sm:$0xff] }
 0x1fe   : > { %v1539_v41 = vsel %vm1528_vm8, %v1506_v22, %v2573_v50  ;;  %v1540_v51 = vsel %vm1528_vm8, %v1507_v29, %v2574_v17  ;;  %v4782_v17 = vld [vmem:[#allocation2_spill] sm:$0xff] }
 0x1ff   : > { %v2587_v33 = vpop.permute.xlu1 %2586  ;;  %v1571_v12 = vpack.c.bf16 %v1540_v51, %v1539_v41  ;;  %v2583_v41 = vunpack.i.l.bf16 %v2582_v37 }
 0x200   : > { %v2589_v38 = vunpack.i.h.bf16 %v2587_v33  ;;  %v2588_v54 = vunpack.i.l.bf16 %v2587_v33  ;;  %v2584_v33 = vunpack.i.h.bf16 %v2582_v37 }
 0x201   : > { %v2577_v44 = vpop.permute.xlu0 %2576  ;;  %1794 = vmatmul.mubr.bf16.vlgmr.msra.gmra.mrb[0].mxu1 %v1571_v12 }
 0x202   : > { %2353 = vmatprep.mubr.msk.bf16.mxu1 %vm1463_vm7, %v4777_v9  ;;  %v1477_v10 = vsel %vm1463_vm7, %v3265_v23, %v2589_v38  ;;  %v1476_v47 = vsel %vm1463_vm7, %v3253_v21, %v2588_v54  ;;  %v2579_v24 = vunpack.i.h.bf16 %v2577_v44  ;;  %v2578_v23 = vunpack.i.l.bf16 %v2577_v44 }
 0x203   : > { %v2597_v42 = vpop.permute.xlu1 %2596 }
 0x204   : > { %v2599_v15 = vunpack.i.h.bf16 %v2597_v42  ;;  %v2598_v43 = vunpack.i.l.bf16 %v2597_v42 }
 0x205   : > { %v2592_v5 = vpop.permute.xlu0 %2591 }
 0x206   : > { %v2594_v60 = vunpack.i.h.bf16 %v2592_v5  ;;  %v2593_v49 = vunpack.i.l.bf16 %v2592_v5 }
 0x207   : > { %v2607_v16 = vpop.permute.xlu1 %2606 }
 0x208   : > { %v1509_v62 = vsel %vm607_vm4, %v1477_v10, %v2594_v60  ;;  %v1508_v39 = vsel %vm607_vm4, %v1476_v47, %v2593_v49  ;;  %v2609_v27 = vunpack.i.h.bf16 %v2607_v16  ;;  %v2608_v25 = vunpack.i.l.bf16 %v2607_v16  ;;  %v4783_v10 = vld [vmem:[#allocation45_spill] sm:$0xff]  ;;  %v4784_v47 = vld [vmem:[#allocation46_spill] sm:$0xff] }
 0x209   : > { %v2602_v59 = vpop.permute.xlu0 %2601  ;;  %v1541_v56 = vsel %vm1528_vm8, %v1508_v39, %v2598_v43  ;;  %v1542_v52 = vsel %vm1528_vm8, %v1509_v62, %v2599_v15  ;;  %v4785_v37 = vpack.c.bf16 %v4783_v10, %v4784_v47  ;;  %v4795_v10 = vld [vmem:[#allocation50_spill] sm:$0xff]  ;;  %v4796_v47 = vld [vmem:[#allocation51_spill] sm:$0xff] }
 0x20a   : > { %v2604_v57 = vunpack.i.h.bf16 %v2602_v59  ;;  %v2603_v20 = vunpack.i.l.bf16 %v2602_v59  ;;  %v1573_v32 = vpack.c.bf16 %v1542_v52, %v1541_v56  ;;  %v4786_v59 = vld [vmem:[#allocation23_spill] sm:$0xff]  ;;  %v4787_v52 = vld [vmem:[#allocation21_spill] sm:$0xff] }
 0x20b   : > { %v2622_v2 = vpop.permute.xlu1 %2621 }
 0x20c   : > { %v1479_v21 = vsel %vm1463_vm7, %v3258_v4, %v2604_v57  ;;  %v1478_v35 = vsel %vm1463_vm7, %v3231_v36, %v2603_v20  ;;  %1802 = vmatmul.mubr.bf16.gmra.mrb[4].mxu1 %v1573_v32  ;;  %v1467_v4 = vsel %vm1463_vm7, %v4781_v58, %v2579_v24  ;;  %v1466_v36 = vsel %vm1463_vm7, %v4782_v17, %v2578_v23  ;;  %v4788_v24 = vld [vmem:[#allocation47_spill] sm:$0xff] }
 0x20d   : > { %v2612_v31 = vpop.permute.xlu0 %2611  ;;  %2354 = vmatprep.mubr.msk.bf16.mxu1 %vm1463_vm7, %v4780_v8  ;;  %v1510_v48 = vsel %vm607_vm4, %v1478_v35, %v2608_v25  ;;  %v1511_v63 = vsel %vm607_vm4, %v1479_v21, %v2609_v27  ;;  %v2624_v54 = vunpack.i.h.bf16 %v2622_v2  ;;  %v2623_v9 = vunpack.i.l.bf16 %v2622_v2 }
 0x20e   : > { %v2614_v3 = vunpack.i.h.bf16 %v2612_v31  ;;  %v2613_v28 = vunpack.i.l.bf16 %v2612_v31  ;;  %v1498_v42 = vsel %vm607_vm4, %v1466_v36, %v2583_v41  ;;  %v1499_v15 = vsel %vm607_vm4, %v1467_v4, %v2584_v33  ;;  %v4792_v36 = vld [vmem:[#allocation48_spill] sm:$0xff] }
 0x20f   : > { %v2632_v50 = vpop.permute.xlu1 %2631  ;;  %v1481_v56 = vsel %vm1463_vm7, %v4786_v59, %v2624_v54  ;;  %v1480_v57 = vsel %vm1463_vm7, %v4787_v52, %v2623_v9  ;;  %v4789_v23 = vpack.c.bf16 %v3870_v18, %v4788_v24 }
 0x210   : > { %v1543_v22 = vsel %vm1528_vm8, %v1510_v48, %v2613_v28  ;;  %v1544_v29 = vsel %vm1528_vm8, %v1511_v63, %v2614_v3  ;;  %v2634_v20 = vunpack.i.h.bf16 %v2632_v50  ;;  %v2633_v32 = vunpack.i.l.bf16 %v2632_v50  ;;  %v4790_v3 = vld [vmem:[#allocation22_spill] sm:$0xff]  ;;  %v4791_v48 = vld [vmem:[#allocation20_spill] sm:$0xff]  ;;  %v4793_v50 = vld [vmem:[#allocation49_spill] sm:$0xff] }
 0x211   : > { %v2617_v51 = vpop.permute.xlu0 %2616  ;;  %v1575_v44 = vpack.c.bf16 %v1544_v29, %v1543_v22  ;;  %v4794_v22 = vpack.c.bf16 %v4792_v36, %v4793_v50 }
 0x212   : > { %v2619_v12 = vunpack.i.h.bf16 %v2617_v51  ;;  %v2618_v38 = vunpack.i.l.bf16 %v2617_v51 }
 0x213   : > { %v2642_v43 = vpop.permute.xlu1 %2641 }
 0x214   : > { %1810 = vmatmul.mubr.bf16.gmra.mrb[8].mxu1 %v1575_v44  ;;  %v1531_v5 = vsel %vm1528_vm8, %v1498_v42, %v2618_v38  ;;  %v1532_v60 = vsel %vm1528_vm8, %v1499_v15, %v2619_v12  ;;  %v2644_v18 = vunpack.i.h.bf16 %v2642_v43  ;;  %v2643_v4 = vunpack.i.l.bf16 %v2642_v43 }
 0x215   : > { %v2627_v49 = vpop.permute.xlu0 %2626  ;;  %2355 = vmatprep.mubr.msk.bf16.mxu1 %vm1463_vm7, %v4785_v37  ;;  %v1563_v62 = vpack.c.bf16 %v1532_v60, %v1531_v5  ;;  %v4797_v37 = vpack.c.bf16 %v4795_v10, %v4796_v47 }
 0x216   : > { %v2629_v39 = vunpack.i.h.bf16 %v2627_v49  ;;  %v2628_v16 = vunpack.i.l.bf16 %v2627_v49 }
 0x217   : > { %1762 = vmatmul.mubr.bf16.gmra.mrb[36].mxu0 %v1563_v62  ;;  %v2657_v21 = vpop.permute.xlu1 %2656 }
 0x218   : > { %v1513_v27 = vsel %vm607_vm4, %v1481_v56, %v2629_v39  ;;  %v1512_v25 = vsel %vm607_vm4, %v1480_v57, %v2628_v16  ;;  %2349 = vmatprep.mubr.msk.bf16.mxu0 %vm1463_vm7, %v4789_v23  ;;  %v4798_v16 = vld [vmem:[#allocation27_spill] sm:$0xff]  ;;  %v4799_v56 = vld [vmem:[#allocation25_spill] sm:$0xff] }
 0x219   : > { %v2637_v35 = vpop.permute.xlu0 %2636  ;;  %v1545_v2 = vsel %vm1528_vm8, %v1512_v25, %v2633_v32  ;;  %v1546_v31 = vsel %vm1528_vm8, %v1513_v27, %v2634_v20  ;;  %v4800_v32 = vld [vmem:[#allocation8_spill] sm:$0xff]  ;;  %v4801_v25 = vld [vmem:[#allocation6_spill] sm:$0xff] }
 0x21a   : > { %v2639_v13 = vunpack.i.h.bf16 %v2637_v35  ;;  %v2638_v34 = vunpack.i.l.bf16 %v2637_v35  ;;  %v1577_v8 = vpack.c.bf16 %v1546_v31, %v1545_v2  ;;  %v2659_v31 = vunpack.i.h.bf16 %v2657_v21 }
 0x21c   : > { %v1483_v28 = vsel %vm1463_vm7, %v4790_v3, %v2639_v13  ;;  %v1482_v63 = vsel %vm1463_vm7, %v4791_v48, %v2638_v34  ;;  %1818 = vmatmul.mubr.bf16.gmra.mrb[12].mxu1 %v1577_v8  ;;  %v2662_v58 = vpop.permute.xlu1 %2661  ;;  %v2658_v13 = vunpack.i.l.bf16 %v2657_v21 }
 0x21d   : > { %2356 = vmatprep.mubr.msk.bf16.mxu1 %vm1463_vm7, %v4794_v22  ;;  %v1514_v41 = vsel %vm607_vm4, %v1482_v63, %v2643_v4  ;;  %v1515_v51 = vsel %vm607_vm4, %v1483_v28, %v2644_v18  ;;  %v2664_v42 = vunpack.i.h.bf16 %v2662_v58  ;;  %v2663_v15 = vunpack.i.l.bf16 %v2662_v58 }
 0x21e   : > { %v2647_v17 = vpop.permute.xlu0 %2646 }
 0x21f   : > { %v2649_v29 = vunpack.i.h.bf16 %v2647_v17  ;;  %v2648_v33 = vunpack.i.l.bf16 %v2647_v17  ;;  %v1485_v59 = vsel %vm1463_vm7, %v4798_v16, %v2664_v42  ;;  %v1484_v52 = vsel %vm1463_vm7, %v4799_v56, %v2663_v15 }
 0x221   : > { %v1547_v12 = vsel %vm1528_vm8, %v1514_v41, %v2648_v33  ;;  %v1548_v38 = vsel %vm1528_vm8, %v1515_v51, %v2649_v29  ;;  %v4802_v41 = vpack.c.bf16 %v3930_v14, %v3938_v19 }
 0x222   : > { %v1579_v9 = vpack.c.bf16 %v1548_v38, %v1547_v12  ;;  %v4803_v38 = vld [vmem:[#allocation26_spill] sm:$0xff] }
 0x223   : > { %v2677_v44 = vpop.permute.xlu1 %2676 }
 0x224   : > { %v2652_v54 = vpop.permute.xlu0 %2651  ;;  %1826 = vmatmul.mubr.bf16.gmra.mrb[16].mxu1 %v1579_v9  ;;  %v2679_v57 = vunpack.i.h.bf16 %v2677_v44  ;;  %v2678_v20 = vunpack.i.l.bf16 %v2677_v44  ;;  %v4804_v9 = vld [vmem:[#allocation24_spill] sm:$0xff] }
 0x225   : > { %v2654_v43 = vunpack.i.h.bf16 %v2652_v54  ;;  %v2653_v5 = vunpack.i.l.bf16 %v2652_v54  ;;  %2357 = vmatprep.mubr.msk.bf16.mxu1 %vm1463_vm7, %v4797_v37 }
 0x227   : > { %v1469_v27 = vsel %vm1463_vm7, %v4800_v32, %v2654_v43  ;;  %v1468_v24 = vsel %vm1463_vm7, %v4801_v25, %v2653_v5  ;;  %v4805_v5 = vpack.c.bf16 %v3946_v26, %v3960_v7  ;;  %v4806_v26 = vld [vmem:[#allocation34_spill] sm:$0xff]  ;;  %v4808_v32 = vld [vmem:[#allocation31_spill] sm:$0xff]  ;;  %v4809_v25 = vld [vmem:[#allocation29_spill] sm:$0xff] }
 0x228   : > { %v1500_v4 = vsel %vm607_vm4, %v1468_v24, %v2658_v13  ;;  %v1501_v17 = vsel %vm607_vm4, %v1469_v27, %v2659_v31  ;;  %v4807_v7 = vpack.c.bf16 %v3968_v53, %v4806_v26  ;;  %v4811_v31 = vld [vmem:[#allocation5_spill] sm:$0xff] }
 0x22b   : > { %v2682_v60 = vpop.permute.xlu1 %2681 }
 0x22c   : > { %v2684_v58 = vunpack.i.h.bf16 %v2682_v60  ;;  %v2683_v18 = vunpack.i.l.bf16 %v2682_v60 }
 0x22e   : > { %v1487_v54 = vsel %vm1463_vm7, %v4803_v38, %v2684_v58  ;;  %v1486_v42 = vsel %vm1463_vm7, %v4804_v9, %v2683_v18 }
 0x230   : > { %v2667_v49 = vpop.permute.xlu0 %2666 }
 0x231   : > { %v2669_v62 = vunpack.i.h.bf16 %v2667_v49  ;;  %v2668_v39 = vunpack.i.l.bf16 %v2667_v49 }
 0x233   : > { %v1517_v23 = vsel %vm607_vm4, %v1485_v59, %v2669_v62  ;;  %v1516_v35 = vsel %vm607_vm4, %v1484_v52, %v2668_v39 }
 0x234   : > { %v1549_v8 = vsel %vm1528_vm8, %v1516_v35, %v2678_v20  ;;  %v1550_v3 = vsel %vm1528_vm8, %v1517_v23, %v2679_v57  ;;  %v4810_v23 = vld [vmem:[#allocation7_spill] sm:$0xff] }
 0x235   : > { %v1581_v63 = vpack.c.bf16 %v1550_v3, %v1549_v8 }
 0x237   : > { %1834 = vmatmul.mubr.bf16.gmra.mrb[20].mxu1 %v1581_v63 }
 0x238   : > { %v4232_v2 = vpop.permute.xlu1 %2696  ;;  %2358 = vmatprep.mubr.msk.bf16.mxu1 %vm1463_vm7, %v4802_v41 }
 0x239   : > { %v2699_v3 = vunpack.i.h.bf16 %v4232_v2 }
 0x23a   : > { %v2672_v34 = vpop.permute.xlu0 %2671 }
 0x23b   : > { %v2674_v28 = vunpack.i.h.bf16 %v2672_v34  ;;  %v2673_v48 = vunpack.i.l.bf16 %v2672_v34 }
 0x23c   : > { %v2702_v36 = vpop.permute.xlu1 %2701 }
 0x23d   : > { %v1533_v50 = vsel %vm1528_vm8, %v1500_v4, %v2673_v48  ;;  %v1534_v21 = vsel %vm1528_vm8, %v1501_v17, %v2674_v28  ;;  %v2704_v22 = vunpack.i.h.bf16 %v2702_v36  ;;  %v2703_v29 = vunpack.i.l.bf16 %v2702_v36 }
 0x23e   : > { %v2687_v33 = vpop.permute.xlu0 %2686  ;;  %v1565_v51 = vpack.c.bf16 %v1534_v21, %v1533_v50  ;;  %v2698_v28 = vunpack.i.l.bf16 %v4232_v2 }
 0x23f   : > { %v2689_v44 = vunpack.i.h.bf16 %v2687_v33  ;;  %v2688_v12 = vunpack.i.l.bf16 %v2687_v33 }
 0x240   : > { %1770 = vmatmul.mubr.bf16.gmra.mrb[40].mxu0 %v1565_v51  ;;  %v2707_v14 = vpop.permute.xlu1 %2706  ;;  %v4812_v51 = vld [vmem:[#allocation35_spill] sm:$0xff] }
 0x241   : > { %v1519_v15 = vsel %vm607_vm4, %v1487_v54, %v2689_v44  ;;  %v1518_v43 = vsel %vm607_vm4, %v1486_v42, %v2688_v12  ;;  %2350 = vmatprep.mubr.msk.bf16.mxu0 %vm1463_vm7, %v4805_v5  ;;  %v2709_v47 = vunpack.i.h.bf16 %v2707_v14  ;;  %v2708_v37 = vunpack.i.l.bf16 %v2707_v14  ;;  %v4813_v44 = vld [vmem:[#allocation32_spill] sm:$0xff] }
 0x242   : > { %v2692_v19 = vpop.permute.xlu0 %2691  ;;  %v1551_v60 = vsel %vm1528_vm8, %v1518_v43, %v2703_v29  ;;  %v1552_v49 = vsel %vm1528_vm8, %v1519_v15, %v2704_v22  ;;  %v4814_v12 = vpack.c.bf16 %v4812_v51, %v4813_v44  ;;  %v4815_v42 = vpack.c.bf16 %v4006_v30, %v4014_v61  ;;  %v4816_v43 = vld [vmem:[#allocation30_spill] sm:$0xff]  ;;  %v4817_v14 = vld [vmem:[#allocation28_spill] sm:$0xff] }
 0x243   : > { %v1583_v10 = vpack.c.bf16 %v1552_v49, %v1551_v60  ;;  %v2694_v62 = vunpack.i.h.bf16 %v2692_v19  ;;  %v2693_v39 = vunpack.i.l.bf16 %v2692_v19  ;;  %v1489_v27 = vsel %vm1463_vm7, %v4808_v32, %v2709_v47  ;;  %v4821_v51 = vld [vmem:[#allocation38_spill] sm:$0xff] }
 0x244   : > { %v2722_v16 = vpop.permute.xlu1 %2721  ;;  %v1488_v24 = vsel %vm1463_vm7, %v4809_v25, %v2708_v37  ;;  %v4819_v25 = vld [vmem:[#allocation14_spill] sm:$0xff] }
 0x245   : > { %1842 = vmatmul.mubr.bf16.gmra.mrb[24].mxu1 %v1583_v10  ;;  %v2724_v59 = vunpack.i.h.bf16 %v2722_v16  ;;  %v2723_v56 = vunpack.i.l.bf16 %v2722_v16  ;;  %v1471_v35 = vsel %vm1463_vm7, %v4810_v23, %v2694_v62  ;;  %v1470_v13 = vsel %vm1463_vm7, %v4811_v31, %v2693_v39  ;;  %v4820_v23 = vld [vmem:[#allocation12_spill] sm:$0xff] }
 0x246   : > { %v2712_v52 = vpop.permute.xlu0 %2711  ;;  %2359 = vmatprep.mubr.msk.bf16.mxu1 %vm1463_vm7, %v4807_v7  ;;  %v1502_v36 = vsel %vm607_vm4, %v1470_v13, %v2698_v28  ;;  %v1503_v50 = vsel %vm607_vm4, %v1471_v35, %v2699_v3 }
 0x247   : > { %v2714_v57 = vunpack.i.h.bf16 %v2712_v52  ;;  %v2713_v20 = vunpack.i.l.bf16 %v2712_v52 }
 0x248   : > { %v2727_v8 = vpop.permute.xlu1 %2726 }
 0x249   : > { %v1521_v34 = vsel %vm607_vm4, %v1489_v27, %v2714_v57  ;;  %v1520_v53 = vsel %vm607_vm4, %v1488_v24, %v2713_v20  ;;  %v2729_v33 = vunpack.i.h.bf16 %v2727_v8  ;;  %v2728_v2 = vunpack.i.l.bf16 %v2727_v8 }
 0x24a   : > { %v2717_v48 = vpop.permute.xlu0 %2716  ;;  %v1553_v63 = vsel %vm1528_vm8, %v1520_v53, %v2723_v56  ;;  %v1554_v58 = vsel %vm1528_vm8, %v1521_v34, %v2724_v59  ;;  %v4818_v27 = vpack.c.bf16 %v4022_v45, %v4036_v6 }
 0x24b   : > { %v2719_v18 = vunpack.i.h.bf16 %v2717_v48  ;;  %v2718_v4 = vunpack.i.l.bf16 %v2717_v48  ;;  %v1585_v17 = vpack.c.bf16 %v1554_v58, %v1553_v63  ;;  %v1491_v5 = vsel %vm1463_vm7, %v4816_v43, %v2729_v33 }
 0x24c   : > { %v2742_v21 = vpop.permute.xlu1 %2741  ;;  %v1490_v19 = vsel %vm1463_vm7, %v4817_v14, %v2728_v2  ;;  %v2070_v14 = vld [vmem:[%s4481_s5 + $0x18] sm:$0xff] }
 0x24d   : > { %1850 = vmatmul.mubr.bf16.gmra.mrb[28].mxu1 %v1585_v17  ;;  %v1535_v22 = vsel %vm1528_vm8, %v1502_v36, %v2718_v4  ;;  %v1536_v29 = vsel %vm1528_vm8, %v1503_v50, %v2719_v18  ;;  %v2744_v13 = vunpack.i.h.bf16 %v2742_v21  ;;  %v2743_v34 = vunpack.i.l.bf16 %v2742_v21 }
 0x24e   : > { %v2732_v41 = vpop.permute.xlu0 %2731  ;;  %2360 = vmatprep.mubr.msk.bf16.mxu1 %vm1463_vm7, %v4814_v12  ;;  %v1567_v38 = vpack.c.bf16 %v1536_v29, %v1535_v22 }
 0x24f   : > { %v2734_v54 = vunpack.i.h.bf16 %v2732_v41  ;;  %v2733_v9 = vunpack.i.l.bf16 %v2732_v41 }
 0x250   : > { %1778 = vmatmul.mubr.bf16.gmra.mrb[44].mxu0 %v1567_v38  ;;  %v2747_v15 = vpop.permute.xlu1 %2746 }
 0x251   : > { %2351 = vmatprep.mubr.msk.bf16.mxu0 %vm1463_vm7, %v4815_v42  ;;  %v2749_v60 = vunpack.i.h.bf16 %v2747_v15  ;;  %v2748_v49 = vunpack.i.l.bf16 %v2747_v15  ;;  %v1523_v47 = vsel %vm607_vm4, %v1491_v5, %v2734_v54  ;;  %v1522_v37 = vsel %vm607_vm4, %v1490_v19, %v2733_v9  ;;  %v2067_v5 = vld [vmem:[%s4481_s5] sm:$0xff] }
 0x252   : > { %v2737_v10 = vpop.permute.xlu0 %2736  ;;  %v2480_v11 = vpack.c.bf16 %v2068_v46, %v2067_v5 }
 0x253   : > { %v1555_v62 = vsel %vm1528_vm8, %v1522_v37, %v2748_v49  ;;  %v1556_v61 = vsel %vm1528_vm8, %v1523_v47, %v2749_v60  ;;  %v2739_v30 = vunpack.i.h.bf16 %v2737_v10  ;;  %v2738_v39 = vunpack.i.l.bf16 %v2737_v10  ;;  %v2071_v60 = vld [vmem:[%s4481_s5 + $0x20] sm:$0xff]  ;;  %v2072_v49 = vld [vmem:[%s4481_s5 + $0x28] sm:$0xff]  ;;  %v2073_v10 = vld [vmem:[%s4481_s5 + $0x30] sm:$0xff] }
 0x254   : > { %v2752_v16 = vpop.permute.xlu1 %2751  ;;  %v1587_v59 = vpack.c.bf16 %v1556_v61, %v1555_v62  ;;  %2481 = vmatprep.subr.bf16.mxu0 %v2480_v11  ;;  %v2488_v47 = vpack.c.bf16 %v2072_v49, %v2071_v60  ;;  %v2074_v37 = vld [vmem:[%s4481_s5 + $0x38] sm:$0xff]  ;;  %v2075_v61 = vld [vmem:[%s4481_s5 + $0x40] sm:$0xff] }
 0x255   : > { %v2754_v56 = vunpack.i.h.bf16 %v2752_v16  ;;  %v2753_v52 = vunpack.i.l.bf16 %v2752_v16  ;;  %v1473_v24 = vsel %vm1463_vm7, %v4819_v25, %v2739_v30  ;;  %v1472_v35 = vsel %vm1463_vm7, %v4820_v23, %v2738_v39  ;;  %2483 = vmatpush3.bf16.msra.mxu0 %v2480_v11  ;;  %v2076_v30 = vld [vmem:[%s4481_s5 + $0x48] sm:$0xff]  ;;  %v2077_v16 = vld [vmem:[%s4481_s5 + $0x50] sm:$0xff] }
 0x256   : > { %v2757_v26 = vpop.permute.xlu0 %2756  ;;  %1858 = vmatmul.mubr.bf16.gmra.mrb[32].mxu1 %v1587_v59  ;;  %v1504_v6 = vsel %vm607_vm4, %v1472_v35, %v2743_v34  ;;  %v1505_v48 = vsel %vm607_vm4, %v1473_v24, %v2744_v13  ;;  %v2492_v62 = vpack.c.bf16 %v2074_v37, %v2073_v10  ;;  %v2496_v39 = vpack.c.bf16 %v2076_v30, %v2075_v61  ;;  %v2078_v59 = vld [vmem:[%s4481_s5 + $0x58] sm:$0xff]  ;;  %v2079_v24 = vld [vmem:[%s4481_s5 + $0x60] sm:$0xff]  ;;  %v2080_v23 = vld [vmem:[%s4481_s5 + $0x68] sm:$0xff] }
 0x257   : > { %v2759_v7 = vunpack.i.h.bf16 %v2757_v26  ;;  %v2758_v57 = vunpack.i.l.bf16 %v2757_v26  ;;  %v1493_v20 = vsel %vm1463_vm7, %v3600_v55, %v2754_v56  ;;  %v1492_v32 = vsel %vm1463_vm7, %v4720_v40, %v2753_v52  ;;  %2361 = vmatprep.mubr.msk.bf16.mxu1 %vm1463_vm7, %v4818_v27  ;;  %v4365_v52 = vld [vmem:[%s4479_s3] sm:$0xff]  ;;  %v4370_v26 = vld [vmem:[%s4479_s3 + $0x8] sm:$0xff]  ;;  %v2081_v13 = vld [vmem:[%s4481_s5 + $0x70] sm:$0xff] }
 0x258   : > { %v2767_v31 = vpop.permute.xlu1 %2766  ;;  %v2082_v34 = vld [vmem:[%s4481_s5 + $0x78] sm:$0xff] }
 0x259   : > { %v2769_v53 = vunpack.i.h.bf16 %v2767_v31  ;;  %v2768_v8 = vunpack.i.l.bf16 %v2767_v31  ;;  %v1525_v3 = vsel %vm607_vm4, %v1493_v20, %v2759_v7  ;;  %v1524_v40 = vsel %vm607_vm4, %v1492_v32, %v2758_v57 }
 0x25a   : > { %v2762_v55 = vpop.permute.xlu0 %2761  ;;  %v2500_v20 = vpack.c.bf16 %v2078_v59, %v2077_v16  ;;  %v2504_v31 = vpack.c.bf16 %v2080_v23, %v2079_v24 }
 0x25b   : > { %v2764_v28 = vunpack.i.h.bf16 %v2762_v55  ;;  %v2763_v45 = vunpack.i.l.bf16 %v2762_v55  ;;  %v1557_v63 = vsel %vm1528_vm8, %v1524_v40, %v2768_v8  ;;  %v1558_v58 = vsel %vm1528_vm8, %v1525_v3, %v2769_v53 }
 0x25c   : > { %v2772_v18 = vpop.permute.xlu1 %2771  ;;  %v1589_v36 = vpack.c.bf16 %v1558_v58, %v1557_v63  ;;  %v2508_v53 = vpack.c.bf16 %v2082_v34, %v2081_v13 }
 0x25d   : > { %v1537_v4 = vsel %vm1528_vm8, %v1504_v6, %v2763_v45  ;;  %v1538_v17 = vsel %vm1528_vm8, %v1505_v48, %v2764_v28  ;;  %v2774_v50 = vunpack.i.h.bf16 %v2772_v18  ;;  %v2773_v21 = vunpack.i.l.bf16 %v2772_v18 }
 0x25e   : > { %v2777_v22 = vpop.permute.xlu0 %2776  ;;  %v1569_v29 = vpack.c.bf16 %v1538_v17, %v1537_v4  ;;  %1866 = vmatmul.mubr.bf16.gmra.mrb[36].mxu1 %v1589_v36 }
 0x25f   : > { %v2779_v33 = vunpack.i.h.bf16 %v2777_v22  ;;  %v2778_v2 = vunpack.i.l.bf16 %v2777_v22  ;;  %v1495_v41 = vsel %vm1463_vm7, %v4739_v1, %v2774_v50  ;;  %v1494_v44 = vsel %vm1463_vm7, %v4821_v51, %v2773_v21  ;;  %2362 = vmatprep.mubr.msk.bf16.mxu1 %vm1463_vm7, %v1592_v0  ;;  %v2069_v0 = vld [vmem:[%s4481_s5 + $0x10] sm:$0xff] }
 0x260   : > { %1786 = vmatmul.mubr.bf16.gmra.mrb[48].mxu0 %v1569_v29  ;;  %v2782_v12 = vpop.permute.xlu1 %2781  ;;  %v2484_v19 = vpack.c.bf16 %v2070_v14, %v2069_v0 }
 0x261   : > { %v2784_v38 = vunpack.i.h.bf16 %v2782_v12  ;;  %v2783_v54 = vunpack.i.l.bf16 %v2782_v12  ;;  %v1527_v9 = vsel %vm607_vm4, %v1495_v41, %v2779_v33  ;;  %v1526_v42 = vsel %vm607_vm4, %v1494_v44, %v2778_v2 }
 0x262   : > { %2485 = vmatprep.subr.bf16.mxu0 %v2484_v19  ;;  %vm2107_vm4 = vcmask 1041409  }
 0x263   : > { %v1559_v15 = vsel %vm1528_vm8, %v1526_v42, %v2783_v54  ;;  %v1560_v1 = vsel %vm1528_vm8, %v1527_v9, %v2784_v38  ;;  %2487 = vmatpush3.bf16.msra.mxu0 %v2484_v19 }
 0x264   : > { %v1591_v43 = vpack.c.bf16 %v1560_v1, %v1559_v15  ;;  %2489 = vmatprep.subr.bf16.mxu0 %v2488_v47 }
 0x266   : > { %1874 = vmatmul.mubr.bf16.gmra.mrb[40].mxu1 %v1591_v43 }
 0x267   : > { %2491 = vmatpush3.bf16.msra.mxu0 %v2488_v47 }
 0x268   : > { %2493 = vmatprep.subr.bf16.mxu0 %v2492_v62 }
 0x26b   : > { %2495 = vmatpush3.bf16.msra.mxu0 %v2492_v62 }
 0x26c   : > { %2497 = vmatprep.subr.bf16.mxu0 %v2496_v39 }
 0x26f   : > { %2499 = vmatpush3.bf16.msra.mxu0 %v2496_v39 }
 0x270   : > { %2501 = vmatprep.subr.bf16.mxu0 %v2500_v20 }
 0x273   : > { %2503 = vmatpush3.bf16.msra.mxu0 %v2500_v20  ;;  %v4405_v20 = vld [vmem:[%s4480_s4] ss:$0 sm:$0xff] }
 0x274   : > { %2505 = vmatprep.subr.bf16.mxu0 %v2504_v31 }
 0x277   : > { %2507 = vmatpush3.bf16.msra.mxu0 %v2504_v31 }
 0x278   : > { %2509 = vmatprep.subr.bf16.mxu0 %v2508_v53 }
 0x27b   : > { %2511 = vmatpush3.bf16.msra.mxu0 %v2508_v53 }
 0x2bd   : > { %v1755_v56 = vpop.f32.mrb[32].mxu0 }
 0x2be   : > { %v1757_v7 = vpop.f32.mrb[33].mxu0  ;;  %v1884_v32 = vadd.f32 %v4365_v52, %v1755_v56 }
 0x2bf   : > { %v1758_v57 = vpop.f32.mrb[34].mxu0 }
 0x2c0   : > { %v1885_v27 = vadd.f32 %v4370_v26, %v1758_v57  ;;  %v1760_v25 = vpop.f32.mrb[35].mxu0 }
 0x2c2   : > { %v1916_v35 = vmax.f32 %v1884_v32, %v1885_v27 }
 0x2c4   : > { %v1917_v50 = vrot.slane %v1916_v35, 4 }
 0x2c6   : > { %v1918_v29 = vmax.f32 %v1916_v35, %v1917_v50 }
 0x2c8   : > { %v1919_v9 = vrot.slane %v1918_v29, 2 }
 0x2ca   : > { %v1920_v11 = vmax.f32 %v1918_v29, %v1919_v9 }
 0x2cc   : > { %v1921_v37 = vrot.slane %v1920_v11, 1 }
 0x2ce   : > { %v1922_v56 = vmax.f32 %v1920_v11, %v1921_v37 }
 0x2d0   : > { %v2035_v31 = vadd.f32 %v4405_v20, %v1922_v56 }
 0x2d4   : > { %v1795_v8 = vpop.f32.mrb[0].mxu1 }
 0x2d5   : > { %v1797_v55 = vpop.f32.mrb[1].mxu1  ;;  %v1894_v40 = vadd.f32 %v4365_v52, %v1795_v8 }
 0x2d6   : > { %v1798_v3 = vpop.f32.mrb[2].mxu1 }
 0x2d7   : > { %v1895_v28 = vadd.f32 %v4370_v26, %v1798_v3  ;;  %v1800_v45 = vpop.f32.mrb[3].mxu1 }
 0x2d9   : > { %v4388_v6 = vmax.f32 %v1894_v40, %v1895_v28  ;;  %v2051_v28 = vmax.f32 %v2035_v31, 0.0 }
 0x2df   : > { %v1803_v48 = vpop.f32.mrb[4].mxu1 }
 0x2e0   : > { %v1805_v63 = vpop.f32.mrb[5].mxu1  ;;  %v1896_v18 = vadd.f32 %v4365_v52, %v1803_v48 }
 0x2e1   : > { %v1806_v58 = vpop.f32.mrb[6].mxu1 }
 0x2e2   : > { %v1897_v4 = vadd.f32 %v4370_v26, %v1806_v58  ;;  %v1808_v17 = vpop.f32.mrb[7].mxu1 }
 0x2e4   : > { %v4392_v36 = vmax.f32 %v1896_v18, %v1897_v4 }
 0x2e7   : > { %v1811_v21 = vpop.f32.mrb[8].mxu1 }
 0x2e8   : > { %v1813_v22 = vpop.f32.mrb[9].mxu1  ;;  %v1898_v2 = vadd.f32 %v4365_v52, %v1811_v21 }
 0x2e9   : > { %v1814_v33 = vpop.f32.mrb[10].mxu1 }
 0x2ea   : > { %v1899_v41 = vadd.f32 %v4370_v26, %v1814_v33  ;;  %v1763_v51 = vpop.f32.mrb[36].mxu0  ;;  %v1816_v44 = vpop.f32.mrb[11].mxu1 }
 0x2eb   : > { %v1765_v12 = vpop.f32.mrb[37].mxu0  ;;  %v1886_v42 = vadd.f32 %v4365_v52, %v1763_v51 }
 0x2ec   : > { %v4396_v38 = vmax.f32 %v1898_v2, %v1899_v41  ;;  %v1766_v54 = vpop.f32.mrb[38].mxu0 }
 0x2ed   : > { %v1887_v15 = vadd.f32 %v4370_v26, %v1766_v54  ;;  %v1768_v1 = vpop.f32.mrb[39].mxu0 }
 0x2ef   : > { %v1923_v43 = vmax.f32 %v1886_v42, %v1887_v15  ;;  %v1819_v5 = vpop.f32.mrb[12].mxu1 }
 0x2f0   : > { %v1821_v46 = vpop.f32.mrb[13].mxu1  ;;  %v1900_v19 = vadd.f32 %v4365_v52, %v1819_v5 }
 0x2f1   : > { %v1924_v0 = vrot.slane %v1923_v43, 4  ;;  %v1822_v14 = vpop.f32.mrb[14].mxu1 }
 0x2f2   : > { %v1901_v60 = vadd.f32 %v4370_v26, %v1822_v14  ;;  %v1824_v49 = vpop.f32.mrb[15].mxu1 }
 0x2f3   : > { %v1925_v10 = vmax.f32 %v1923_v43, %v1924_v0 }
 0x2f4   : > { %v1972_v47 = vmax.f32 %v1900_v19, %v1901_v60 }
 0x2f5   : > { %v1926_v62 = vrot.slane %v1925_v10, 2 }
 0x2f6   : > { %v1973_v61 = vrot.slane %v1972_v47, 4 }
 0x2f7   : > { %v1927_v30 = vmax.f32 %v1925_v10, %v1926_v62  ;;  %v1827_v39 = vpop.f32.mrb[16].mxu1 }
 0x2f8   : > { %v1974_v16 = vmax.f32 %v1972_v47, %v1973_v61  ;;  %v1829_v59 = vpop.f32.mrb[17].mxu1  ;;  %v1902_v27 = vadd.f32 %v4365_v52, %v1827_v39 }
 0x2f9   : > { %v1928_v7 = vrot.slane %v1927_v30, 1  ;;  %v1830_v57 = vpop.f32.mrb[18].mxu1 }
 0x2fa   : > { %v1975_v32 = vrot.slane %v1974_v16, 2  ;;  %v1903_v25 = vadd.f32 %v4370_v26, %v1830_v57  ;;  %v1832_v24 = vpop.f32.mrb[19].mxu1 }
 0x2fb   : > { %v1929_v23 = vmax.f32 %v1927_v30, %v1928_v7 }
 0x2fc   : > { %v1979_v35 = vmax.f32 %v1902_v27, %v1903_v25  ;;  %v1976_v34 = vmax.f32 %v1974_v16, %v1975_v32 }
 0x2fd   : > { %v2036_v13 = vadd.f32 %v4405_v20, %v1929_v23 }
 0x2fe   : > { %v1980_v53 = vrot.slane %v1979_v35, 4  ;;  %v1977_v48 = vrot.slane %v1976_v34, 1 }
 0x2ff   : > { %v2052_v8 = vmax.f32 %v2036_v13, 0.0 }
 0x300   : > { %v1981_v3 = vmax.f32 %v1979_v35, %v1980_v53  ;;  %v1978_v41 = vmax.f32 %v1976_v34, %v1977_v48 }
 0x301   : > { %v2106_v45 = vrot.slane %v2052_v8, 7 }
 0x302   : > { %v1982_v58 = vrot.slane %v1981_v3, 2  ;;  %v2043_v46 = vadd.f32 %v4405_v20, %v1978_v41 }
 0x303   : > { %v4414_v22 = vsel %vm2107_vm4, %v2106_v45, %v2051_v28 }
 0x304   : > { %v1983_v29 = vmax.f32 %v1981_v3, %v1982_v58  ;;  %v2059_v39 = vmax.f32 %v2043_v46, 0.0  ;;  %v1966_v46 = vrot.slane %v4396_v38, 4 }
 0x306   : > { %v1984_v54 = vrot.slane %v1983_v29, 1 }
 0x308   : > { %v1985_v1 = vmax.f32 %v1983_v29, %v1984_v54 }
 0x30a   : > { %v1835_v55 = vpop.f32.mrb[20].mxu1  ;;  %v2044_v14 = vadd.f32 %v4405_v20, %v1985_v1 }
 0x30b   : > { %v1837_v40 = vpop.f32.mrb[21].mxu1  ;;  %v1904_v18 = vadd.f32 %v4365_v52, %v1835_v55 }
 0x30c   : > { %v1838_v63 = vpop.f32.mrb[22].mxu1  ;;  %v2060_v37 = vmax.f32 %v2044_v14, 0.0 }
 0x30d   : > { %v1905_v4 = vadd.f32 %v4370_v26, %v1838_v63  ;;  %v1840_v50 = vpop.f32.mrb[23].mxu1 }
 0x30e   : > { %v2127_v16 = vrot.slane %v2060_v37, 7 }
 0x30f   : > { %v1986_v33 = vmax.f32 %v1904_v18, %v1905_v4 }
 0x310   : > { %v2128_v32 = vsel %vm2107_vm4, %v2127_v16, %v2059_v39 }
 0x311   : > { %v1987_v9 = vrot.slane %v1986_v33, 4 }
 0x313   : > { %v1771_v17 = vpop.f32.mrb[40].mxu0  ;;  %v1988_v43 = vmax.f32 %v1986_v33, %v1987_v9 }
 0x314   : > { %v1773_v21 = vpop.f32.mrb[41].mxu0  ;;  %v1888_v51 = vadd.f32 %v4365_v52, %v1771_v17 }
 0x315   : > { %v1774_v2 = vpop.f32.mrb[42].mxu0  ;;  %v1989_v19 = vrot.slane %v1988_v43, 2 }
 0x316   : > { %v1889_v44 = vadd.f32 %v4370_v26, %v1774_v2  ;;  %v1776_v12 = vpop.f32.mrb[43].mxu0 }
 0x317   : > { %v1990_v62 = vmax.f32 %v1988_v43, %v1989_v19 }
 0x318   : > { %v1930_v42 = vmax.f32 %v1888_v51, %v1889_v44  ;;  %v1843_v15 = vpop.f32.mrb[24].mxu1 }
 0x319   : > { %v1845_v5 = vpop.f32.mrb[25].mxu1  ;;  %v1906_v60 = vadd.f32 %v4365_v52, %v1843_v15  ;;  %v1991_v59 = vrot.slane %v1990_v62, 1 }
 0x31a   : > { %v1931_v11 = vrot.slane %v1930_v42, 4  ;;  %v1846_v0 = vpop.f32.mrb[26].mxu1  ;;  %v1959_v5 = vrot.slane %v4392_v36, 4 }
 0x31b   : > { %v1907_v49 = vadd.f32 %v4370_v26, %v1846_v0  ;;  %v1848_v10 = vpop.f32.mrb[27].mxu1  ;;  %v1992_v27 = vmax.f32 %v1990_v62, %v1991_v59  ;;  %v1967_v59 = vmax.f32 %v4396_v38, %v1966_v46 }
 0x31c   : > { %v1932_v47 = vmax.f32 %v1930_v42, %v1931_v11  ;;  %v1952_v42 = vrot.slane %v4388_v6, 4  ;;  %v1960_v16 = vmax.f32 %v4392_v36, %v1959_v5 }
 0x31d   : > { %v1993_v61 = vmax.f32 %v1906_v60, %v1907_v49  ;;  %v2045_v31 = vadd.f32 %v4405_v20, %v1992_v27 }
 0x31e   : > { %v1933_v30 = vrot.slane %v1932_v47, 2  ;;  %v1953_v62 = vmax.f32 %v4388_v6, %v1952_v42 }
 0x31f   : > { %v1994_v56 = vrot.slane %v1993_v61, 4  ;;  %v2061_v28 = vmax.f32 %v2045_v31, 0.0  ;;  %v1961_v31 = vrot.slane %v1960_v16, 2 }
 0x320   : > { %v1934_v7 = vmax.f32 %v1932_v47, %v1933_v30  ;;  %v1851_v57 = vpop.f32.mrb[28].mxu1 }
 0x321   : > { %v1995_v25 = vmax.f32 %v1993_v61, %v1994_v56  ;;  %v1853_v24 = vpop.f32.mrb[29].mxu1  ;;  %v1908_v34 = vadd.f32 %v4365_v52, %v1851_v57  ;;  %v2129_v50 = vrot.slane %v2061_v28, 6 }
 0x322   : > { %v1935_v23 = vrot.slane %v1934_v7, 1  ;;  %v1854_v35 = vpop.f32.mrb[30].mxu1 }
 0x323   : > { %v1996_v13 = vrot.slane %v1995_v25, 2  ;;  %v1909_v53 = vadd.f32 %v4370_v26, %v1854_v35  ;;  %v1779_v8 = vpop.f32.mrb[44].mxu0  ;;  %v1856_v55 = vpop.f32.mrb[31].mxu1  ;;  %v2130_v44 = vsel %vm2110_vm9, %v2129_v50, %v2128_v32 }
 0x324   : > { %v1936_v3 = vmax.f32 %v1934_v7, %v1935_v23  ;;  %v1781_v40 = vpop.f32.mrb[45].mxu0  ;;  %v1890_v18 = vadd.f32 %v4365_v52, %v1779_v8 }
 0x325   : > { %v1997_v45 = vmax.f32 %v1995_v25, %v1996_v13  ;;  %v2000_v48 = vmax.f32 %v1908_v34, %v1909_v53  ;;  %v1782_v63 = vpop.f32.mrb[46].mxu0  ;;  %v1954_v25 = vrot.slane %v1953_v62, 2  ;;  %v1968_v13 = vrot.slane %v1967_v59, 2 }
 0x326   : > { %v2037_v58 = vadd.f32 %v4405_v20, %v1936_v3  ;;  %v1891_v4 = vadd.f32 %v4370_v26, %v1782_v63  ;;  %v1784_v17 = vpop.f32.mrb[47].mxu0 }
 0x327   : > { %v1998_v21 = vrot.slane %v1997_v45, 1  ;;  %v2001_v29 = vrot.slane %v2000_v48, 4 }
 0x328   : > { %v2053_v33 = vmax.f32 %v2037_v58, 0.0  ;;  %v1937_v2 = vmax.f32 %v1890_v18, %v1891_v4  ;;  %v1955_v18 = vmax.f32 %v1953_v62, %v1954_v25 }
 0x329   : > { %v1999_v41 = vmax.f32 %v1997_v45, %v1998_v21  ;;  %v2002_v51 = vmax.f32 %v2000_v48, %v2001_v29  ;;  %v1859_v9 = vpop.f32.mrb[32].mxu1  ;;  %v1962_v21 = vmax.f32 %v1960_v16, %v1961_v31  ;;  %v1969_v29 = vmax.f32 %v1967_v59, %v1968_v13 }
 0x32a   : > { %v2109_v12 = vrot.slane %v2053_v33, 6  ;;  %v1938_v54 = vrot.slane %v1937_v2, 4  ;;  %v1861_v43 = vpop.f32.mrb[33].mxu1  ;;  %v1910_v49 = vadd.f32 %v4365_v52, %v1859_v9  ;;  %v1956_v42 = vrot.slane %v1955_v18, 1 }
 0x32b   : > { %v2046_v15 = vadd.f32 %v4405_v20, %v1999_v41  ;;  %v2003_v1 = vrot.slane %v2002_v51, 2  ;;  %v1862_v0 = vpop.f32.mrb[34].mxu1  ;;  %v1963_v5 = vrot.slane %v1962_v21, 1  ;;  %v1970_v46 = vrot.slane %v1969_v29, 1 }
 0x32c   : > { %v1939_v11 = vmax.f32 %v1937_v2, %v1938_v54  ;;  %v4436_v14 = vsel %vm2110_vm9, %v2109_v12, %v4414_v22  ;;  %v1911_v10 = vadd.f32 %v4370_v26, %v1862_v0  ;;  %v1864_v47 = vpop.f32.mrb[35].mxu1 }
 0x32d   : > { %v2062_v19 = vmax.f32 %v2046_v15, 0.0  ;;  %v2004_v60 = vmax.f32 %v2002_v51, %v2003_v1  ;;  %v1964_v59 = vmax.f32 %v1962_v21, %v1963_v5 }
 0x32e   : > { %v1940_v37 = vrot.slane %v1939_v11, 2  ;;  %v2007_v39 = vmax.f32 %v1910_v49, %v1911_v10 }
 0x32f   : > { %v2131_v61 = vrot.slane %v2062_v19, 5  ;;  %v2005_v30 = vrot.slane %v2004_v60, 1 }
 0x330   : > { %v1941_v22 = vmax.f32 %v1939_v11, %v1940_v37  ;;  %v2008_v7 = vrot.slane %v2007_v39, 4 }
 0x331   : > { %v2006_v56 = vmax.f32 %v2004_v60, %v2005_v30  ;;  %v2132_v57 = vsel %vm2113_vm10, %v2131_v61, %v2130_v44  ;;  %v1867_v27 = vpop.f32.mrb[36].mxu1  ;;  %v1957_v61 = vmax.f32 %v1955_v18, %v1956_v42 }
 0x332   : > { %v1942_v32 = vrot.slane %v1941_v22, 1  ;;  %v2009_v23 = vmax.f32 %v2007_v39, %v2008_v7  ;;  %v1869_v6 = vpop.f32.mrb[37].mxu1  ;;  %v1912_v55 = vadd.f32 %v4365_v52, %v1867_v27 }
 0x333   : > { %v2047_v24 = vadd.f32 %v4405_v20, %v2006_v56  ;;  %v1787_v35 = vpop.f32.mrb[48].mxu0  ;;  %v1870_v36 = vpop.f32.mrb[38].mxu1  ;;  %v1971_v56 = vmax.f32 %v1969_v29, %v1970_v46  ;;  %v2040_v27 = vadd.f32 %v4405_v20, %v1957_v61 }
 0x334   : > { %v1943_v34 = vmax.f32 %v1941_v22, %v1942_v32  ;;  %v1789_v53 = vpop.f32.mrb[49].mxu0  ;;  %v2010_v38 = vrot.slane %v2009_v23, 2  ;;  %v1913_v40 = vadd.f32 %v4370_v26, %v1870_v36  ;;  %v1872_v28 = vpop.f32.mrb[39].mxu1  ;;  %v1892_v48 = vadd.f32 %v4365_v52, %v1787_v35 }
 0x335   : > { %v2063_v8 = vmax.f32 %v2047_v24, 0.0  ;;  %v1790_v3 = vpop.f32.mrb[50].mxu0  ;;  %v2042_v31 = vadd.f32 %v4405_v20, %v1971_v56 }
 0x336   : > { %v2038_v45 = vadd.f32 %v4405_v20, %v1943_v34  ;;  %v1893_v63 = vadd.f32 %v4370_v26, %v1790_v3  ;;  %v1792_v58 = vpop.f32.mrb[51].mxu0  ;;  %v2011_v17 = vmax.f32 %v2009_v23, %v2010_v38  ;;  %v2014_v50 = vmax.f32 %v1912_v55, %v1913_v40 }
 0x337   : > { %v2133_v4 = vrot.slane %v2063_v8, 4  ;;  %v2041_v23 = vadd.f32 %v4405_v20, %v1964_v59  ;;  %v2056_v34 = vmax.f32 %v2040_v27, 0.0  ;;  %v2058_v40 = vmax.f32 %v2042_v31, 0.0 }
 0x338   : > { %v2054_v33 = vmax.f32 %v2038_v45, 0.0  ;;  %v1944_v2 = vmax.f32 %v1892_v48, %v1893_v63  ;;  %v2012_v41 = vrot.slane %v2011_v17, 1  ;;  %v2015_v51 = vrot.slane %v2014_v50, 4 }
 0x339   : > { %v2134_v44 = vsel %vm2116_vm11, %v2133_v4, %v2132_v57  ;;  %v1875_v9 = vpop.f32.mrb[40].mxu1  ;;  %v2057_v38 = vmax.f32 %v2041_v23, 0.0  ;;  %v2118_v48 = vrot.slane %v2056_v34, 3 }
 0x33a   : > { %v2112_v12 = vrot.slane %v2054_v33, 5  ;;  %v1945_v54 = vrot.slane %v1944_v2, 4  ;;  %v2013_v15 = vmax.f32 %v2011_v17, %v2012_v41  ;;  %v2016_v1 = vmax.f32 %v2014_v50, %v2015_v51  ;;  %v1877_v43 = vpop.f32.mrb[41].mxu1  ;;  %v2364_v51 = vld [vmem:[%s4482_s6] ss:$0 sm:$0xff] }
 0x33b   : > { %v1878_v0 = vpop.f32.mrb[42].mxu1  ;;  %v1914_v10 = vadd.f32 %v4365_v52, %v1875_v9  ;;  %v2121_v18 = vrot.slane %v2057_v38, 2  ;;  %v2124_v50 = vrot.slane %v2058_v40, 1 }
 0x33c   : > { %v1946_v11 = vmax.f32 %v1944_v2, %v1945_v54  ;;  %v2114_v19 = vsel %vm2113_vm10, %v2112_v12, %v4436_v14  ;;  %v2048_v60 = vadd.f32 %v4405_v20, %v2013_v15  ;;  %v2017_v49 = vrot.slane %v2016_v1, 2  ;;  %v1880_v37 = vpop.f32.mrb[43].mxu1 }
 0x33d   : > { %v1915_v47 = vadd.f32 %v4370_v26, %v1878_v0 }
 0x33e   : > { %v1947_v62 = vrot.slane %v1946_v11, 2  ;;  %v2064_v30 = vmax.f32 %v2048_v60, 0.0  ;;  %v2018_v39 = vmax.f32 %v2016_v1, %v2017_v49 }
 0x33f   : > { %v2021_v16 = vmax.f32 %v1914_v10, %v1915_v47 }
 0x340   : > { %v1948_v22 = vmax.f32 %v1946_v11, %v1947_v62  ;;  %v2135_v7 = vrot.slane %v2064_v30, 3  ;;  %v2019_v57 = vrot.slane %v2018_v39, 1 }
 0x341   : > { %v2022_v14 = vrot.slane %v2021_v16, 4 }
 0x342   : > { %v1949_v32 = vrot.slane %v1948_v22, 1  ;;  %v2020_v25 = vmax.f32 %v2018_v39, %v2019_v57  ;;  %v2136_v26 = vsel %vm2119_vm12, %v2135_v7, %v2134_v44 }
 0x343   : > { %v2023_v52 = vmax.f32 %v2021_v16, %v2022_v14 }
 0x344   : > { %v1950_v24 = vmax.f32 %v1948_v22, %v1949_v32  ;;  %v2049_v35 = vadd.f32 %v4405_v20, %v2020_v25 }
 0x345   : > { %v2024_v6 = vrot.slane %v2023_v52, 2 }
 0x346   : > { %v2039_v13 = vadd.f32 %v4405_v20, %v1950_v24  ;;  %v2065_v53 = vmax.f32 %v2049_v35, 0.0 }
 0x347   : > { %v2025_v36 = vmax.f32 %v2023_v52, %v2024_v6 }
 0x348   : > { %v2055_v8 = vmax.f32 %v2039_v13, 0.0  ;;  %v2137_v55 = vrot.slane %v2065_v53, 2 }
 0x349   : > { %v2026_v3 = vrot.slane %v2025_v36, 1 }
 0x34a   : > { %v2115_v28 = vrot.slane %v2055_v8, 4  ;;  %v2138_v63 = vsel %vm2122_vm13, %v2137_v55, %v2136_v26 }
 0x34b   : > { %v2027_v45 = vmax.f32 %v2025_v36, %v2026_v3 }
 0x34c   : > { %v2117_v58 = vsel %vm2116_vm11, %v2115_v28, %v2114_v19 }
 0x34d   : > { %v2050_v4 = vadd.f32 %v4405_v20, %v2027_v45  ;;  %v2120_v17 = vsel %vm2119_vm12, %v2118_v48, %v2117_v58 }
 0x34e   : > { %v2123_v21 = vsel %vm2122_vm13, %v2121_v18, %v2120_v17 }
 0x34f   : > { %v2126_v29 = vsel %vm2125_vm14, %v2124_v50, %v2123_v21  ;;  %v2066_v33 = vmax.f32 %v2050_v4, 0.0 }
 0x350   : > { %2477 = vmatprep.mubr.f32.mxu0 %v2126_v29 }
 0x351   : > { %v2139_v2 = vrot.slane %v2066_v33, 1 }
 0x353   : > { %v2140_v41 = vsel %vm2125_vm14, %v2139_v2, %v2138_v63 }
 0x354   : > { %2478 = vmatmul.mubr.f32.vlgmr.msra.gmra.mrb[52].mxu0 %v2140_v41 }
 0x427   : > { %v2479_v44 = vpop.f32.mrb[52].mxu0 }
 0x428   : > { %v2209_v20 = vpop.f32.mrb[53].mxu0  ;;  %v2215_v54 = vadd.f32 %v2479_v44, %v2364_v51 }
 0x429   : > { %v2210_v12 = vadd.f32 %v2364_v51, %v2209_v20 }
 0x42a   : > { %2219 = vst [vmem:[%s280_s21 + $0x8] sm:$0xff] %v2215_v54 }
 0x42b   : > { %2218 = vst [vmem:[%s280_s21] sm:$0xff] %v2210_v12 }
 0x42c PF: > { %s17_s24 = sadd.s32 1, %s2805_s24  }
 0x42d   : > { %p14_p4 = scmp.ge.s32.totalorder %s17_s24, 6  }
 0x42f   :  { %16 = sbr.rel (!%p14_p4) target bundleno = 1 (0x1), region = 78 }

</bundles_post_ra>
